<compile_context>
chip_gen: v6e
topology: v6e:2x2x1
jax: 0.10.0
libtpu: 0.0.40
codegen_flags: <defaults>
</compile_context>

<pallas_src>
import math
import functools

import jax
import jax.numpy as jnp
from jax import lax
from jax.experimental import pallas as pl
from jax.experimental.pallas import tpu as pltpu


def _mlp_kernel(x_ref, eye3_ref, w_in_ref, b_in_ref, w_h_ref, b_h_ref,
                w_out_t_ref, b_out_ref, o_ref, feat_ref, *,
                num_terms, num_hidden_layers):
    T = num_terms

    # Natural-layout (tile_n, 3) block -> feature-major (3, tile_n) via an
    # exact identity matmul (rhs-transposed contraction; MXU has slack, no
    # XLU transpose, no wrapper transpose).  Rows 0/1 = x/y, row 2 = t.
    xt = lax.dot_general(eye3_ref[...], x_ref[...],
                         (((1,), (1,)), ((), ())),
                         preferred_element_type=jnp.float32)     # (3, tile_n)

    # Stage the input-layer operand (2 + 2T, tile_n) in VMEM scratch.
    feat_ref[0:2, :] = xt[0:2, :]

    # Fourier features via the angle-addition / Chebyshev recurrence:
    #   cos rows: cos(k*a), k = 0..T-1   (k=0 is the constant 1.0 -> free)
    #   sin rows: sin(k*a), k = 1..T
    # with a = 2*pi*t.  Only one cos + one sin evaluation per point.
    a = (2.0 * math.pi) * xt[2:3, :]                             # (1, tile_n)
    c1 = jnp.cos(a)
    s1 = jnp.sin(a)
    ones_row = jnp.ones_like(a)

    feat_ref[2:3, :] = ones_row                                  # cos(0*a) == 1
    if T >= 2:
        feat_ref[3:4, :] = c1                                    # cos(1*a)
    feat_ref[2 + T:3 + T, :] = s1                                # sin(1*a)

    two_c1 = 2.0 * c1
    c_prev, c_cur = ones_row, c1
    s_prev, s_cur = jnp.zeros_like(a), s1
    for k in range(2, T + 1):                     # static unroll, T is small
        c_cur, c_prev = two_c1 * c_cur - c_prev, c_cur           # cos(k*a)
        s_cur, s_prev = two_c1 * s_cur - s_prev, s_cur           # sin(k*a)
        if k <= T - 1:
            feat_ref[2 + k:3 + k, :] = c_cur
        feat_ref[1 + T + k:2 + T + k, :] = s_cur

    # Input layer: a single merged dot over K = 2 + 2T.
    feat = feat_ref[...]
    h = jnp.tanh(
        jnp.dot(w_in_ref[...], feat.astype(w_in_ref.dtype),
                preferred_element_type=jnp.float32)
        + b_in_ref[...])                                          # (H, tile_n)

    # Hidden layers (L is a trace-time constant -> static unroll).
    for l in range(num_hidden_layers):
        h = jnp.tanh(
            jnp.dot(w_h_ref[l], h.astype(w_h_ref.dtype),
                    preferred_element_type=jnp.float32)
            + b_h_ref[l])

    # Output layer with the feature->batch transpose folded into the
    # contraction (transposed-LHS dims): out[n, j] = sum_k h[k, n] * W_out[j, k]
    out = lax.dot_general(h.astype(w_out_t_ref.dtype), w_out_t_ref[...],
                          (((0,), (0,)), ((), ())),
                          preferred_element_type=jnp.float32)     # (tile_n, 3)
    o_ref[...] = (out + b_out_ref[...]).astype(o_ref.dtype)


def ptv_nn_trans_v2_forward(x, params, *, tile_n=None, dot_dtype=jnp.float32):
    """Forward pass of PTV_NN_TRANS_v2.

    x: (N, 3) float32 in the module's natural layout.  Returns (N, 3) float32.

    dot_dtype: matmul-operand dtype.  jnp.bfloat16 frees MXU extended/load
      slot cycles on v6e/v7x but does not meet a 1e-4 comparison against the
      f32 reference, so float32 stays the default.
    """
    assert x.ndim == 2 and x.shape[1] == 3
    N = x.shape[0]
    T = params["w_cos"].shape[0]
    H = params["w_in"].shape[0]
    L = params["w_h"].shape[0]
    assert T >= 1

    if tile_n is None:
        # Aim for ~8 grid steps (>= 2 keeps both v7x TensorCores busy via the
        # "parallel" batch axis) while capping the per-tile VMEM footprint to
        # a few MiB (fits v5e's 16 MiB scoped-VMEM default, no overrides).
        tile_n = min(8192, max(256, -(-N // 8)))
        tile_n = -(-tile_n // 128) * 128
    assert tile_n % 128 == 0, "tile_n must be a multiple of 128 (lane width)"

    num_tiles = pl.cdiv(N, tile_n)
    n_pad = num_tiles * tile_n

    # Natural layout in and out: no HBM transposes around the kernel.  Ragged
    # N only costs a cheap contiguous pad (nothing at all when tile_n | N).
    x_in = x if n_pad == N else jnp.pad(x, ((0, n_pad - N), (0, 0)))

    # Weights keep the PyTorch (out_features, in_features) layout, DMA'd once
    # and kept VMEM-resident via constant index maps.  W_out is pre-transposed
    # so the output contraction yields natural (tile_n, 3) blocks directly.
    w_in = params["w_in"].astype(dot_dtype)                    # (H, 2+2T)
    b_in = params["b_in"].reshape(H, 1).astype(jnp.float32)
    w_h = params["w_h"].astype(dot_dtype)                      # (L, H, H)
    b_h = params["b_h"].reshape(L, H, 1).astype(jnp.float32)
    w_out_t = params["w_out"].T.astype(dot_dtype)              # (H, 3)
    b_out = params["b_out"].reshape(1, 3).astype(jnp.float32)
    eye3 = jnp.eye(3, dtype=jnp.float32)

    kernel = functools.partial(_mlp_kernel, num_terms=T, num_hidden_layers=L)

    def resident(a):
        # Full-array block + constant index map: DMA'd once, stays resident in
        # VMEM across all grid steps (weights are tiny).
        nd = a.ndim
        return pl.BlockSpec(a.shape, lambda i, _nd=nd: (0,) * _nd)

    # Advisory cost estimate: per point, one input dot + L hidden dots + the
    # output dot; (L+1)*H tanh + one cos + one sin; 24 B of useful HBM IO.
    flops_per_pt = 2 * H * (2 + 2 * T) + 2 * L * H * H + 2 * 3 * H + 2 * 3 * 3
    ce = pl.CostEstimate(
        flops=int(n_pad * flops_per_pt),
        transcendentals=int(n_pad * ((L + 1) * H + 2)),
        bytes_accessed=int(n_pad * 24),
    )

    out = pl.pallas_call(
        kernel,
        out_shape=jax.ShapeDtypeStruct((n_pad, 3), jnp.float32),
        grid_spec=pltpu.PrefetchScalarGridSpec(
            num_scalar_prefetch=0,
            grid=(num_tiles,),
            in_specs=[
                pl.BlockSpec((tile_n, 3), lambda i: (i, 0)),   # x tile, natural
                resident(eye3),
                resident(w_in), resident(b_in),
                resident(w_h), resident(b_h),
                resident(w_out_t), resident(b_out),
            ],
            out_specs=pl.BlockSpec((tile_n, 3), lambda i: (i, 0)),
            scratch_shapes=[pltpu.VMEM((2 + 2 * T, tile_n), jnp.float32)],
        ),
        compiler_params=pltpu.CompilerParams(
            # Batch axis is embarrassingly parallel -> megacore sharding.
            dimension_semantics=("parallel",)),
        cost_estimate=ce,
    )(x_in, eye3, w_in, b_in, w_h, b_h, w_out_t, b_out)

    return out if n_pad == N else out[:N]


def init_params(key, num_terms, num_hidden_layers, hidden_size):
    """Deterministic synthetic parameters matching the module's shapes
    (PyTorch nn.Linear layout: weight = (out_features, in_features))."""
    T, L, H = num_terms, num_hidden_layers, hidden_size
    in_dim = 2 + 2 * T

    # Fixed (non-trainable) Fourier weights, exactly as in __init__.
    w_cos = jnp.array([[2.0 * t * math.pi] for t in range(T)], jnp.float32)
    w_sin = jnp.array([[2.0 * (t + 1) * math.pi] for t in range(T)],
                      jnp.float32)

    ks = jax.random.split(key, 6)
    s_in = 1.0 / math.sqrt(in_dim)
    s_h = 1.0 / math.sqrt(H)

    return {
        "w_cos": w_cos,                                             # (T, 1)
        "w_sin": w_sin,                                             # (T, 1)
        "w_in": jax.random.uniform(ks[0], (H, in_dim), jnp.float32,
                                   -s_in, s_in),
        "b_in": jax.random.uniform(ks[1], (H,), jnp.float32, -s_in, s_in),
        "w_h": jax.random.uniform(ks[2], (L, H, H), jnp.float32, -s_h, s_h),
        "b_h": jax.random.uniform(ks[3], (L, H), jnp.float32, -s_h, s_h),
        "w_out": jax.random.uniform(ks[4], (3, H), jnp.float32, -s_h, s_h),
        "b_out": jax.random.uniform(ks[5], (3,), jnp.float32, -s_h, s_h),
    }


def reference_forward(x, params):
    """Pure-JAX reference mirroring the PyTorch forward (x @ W^T + b)."""
    t_col = x[:, 2:3]
    fc = jnp.cos(t_col @ params["w_cos"].T)
    fs = jnp.sin(t_col @ params["w_sin"].T)
    h = jnp.concatenate([x[:, 0:2], fc, fs], axis=1)
    h = jnp.tanh(h @ params["w_in"].T + params["b_in"])
    for l in range(params["w_h"].shape[0]):
        h = jnp.tanh(h @ params["w_h"][l].T + params["b_h"][l])
    return h @ params["w_out"].T + params["b_out"]


if __name__ == "__main__":
    num_terms = 4
    num_hidden_layers = 2
    hidden_size = 32
    batch = 1000          # not a tile multiple: exercises the cheap pad path
    tile_n = 256          # 4 grid tiles at this batch; production auto-picks

    key = jax.random.PRNGKey(0)
    k_param, k_x = jax.random.split(key)

    params = init_params(k_param, num_terms, num_hidden_layers, hidden_size)
    x = jax.random.uniform(k_x, (batch, 3), jnp.float32)

    out = ptv_nn_trans_v2_forward(x, params, tile_n=tile_n)
    out = jax.block_until_ready(out)

    ref = reference_forward(x, params)
    assert out.shape == (batch, 3)
    assert jnp.allclose(out, ref, atol=1e-4, rtol=1e-4), "mismatch vs reference"

    print("KERNEL_OK")
</pallas_src>

<mosaic_0001>
module attributes {stable_mosaic.version = 11 : i64} {
  func.func @_mlp_kernel(%arg0: i32, %arg1: memref<256x3xf32, #tpu.memory_space<vmem>>, %arg2: memref<3x3xf32, #tpu.memory_space<vmem>>, %arg3: memref<32x10xf32, #tpu.memory_space<vmem>>, %arg4: memref<32x1xf32, #tpu.memory_space<vmem>>, %arg5: memref<2x32x32xf32, #tpu.memory_space<vmem>>, %arg6: memref<2x32x1xf32, #tpu.memory_space<vmem>>, %arg7: memref<32x3xf32, #tpu.memory_space<vmem>>, %arg8: memref<1x3xf32, #tpu.memory_space<vmem>>, %arg9: memref<256x3xf32, #tpu.memory_space<vmem>>, %arg10: memref<10x256xf32, #tpu.memory_space<vmem>>) attributes {dimension_semantics = [#tpu.dimension_semantics<parallel>], iteration_bounds = array<i64: 4>, scalar_prefetch = 0 : i64, scratch_operands = 1 : i64, tpu.core_type = #tpu.core_type<tc>, window_params = [{transform_indices = @transform_0, window_bounds = array<i64: 256, 3>}, {pipeline_mode = #tpu.pipeline_mode<synchronous>, transform_indices = @transform_1, window_bounds = array<i64: 3, 3>}, {pipeline_mode = #tpu.pipeline_mode<synchronous>, transform_indices = @transform_2, window_bounds = array<i64: 32, 10>}, {pipeline_mode = #tpu.pipeline_mode<synchronous>, transform_indices = @transform_3, window_bounds = array<i64: 32, 1>}, {pipeline_mode = #tpu.pipeline_mode<synchronous>, transform_indices = @transform_4, window_bounds = array<i64: 2, 32, 32>}, {pipeline_mode = #tpu.pipeline_mode<synchronous>, transform_indices = @transform_5, window_bounds = array<i64: 2, 32, 1>}, {pipeline_mode = #tpu.pipeline_mode<synchronous>, transform_indices = @transform_6, window_bounds = array<i64: 32, 3>}, {pipeline_mode = #tpu.pipeline_mode<synchronous>, transform_indices = @transform_7, window_bounds = array<i64: 1, 3>}, {transform_indices = @transform_8, window_bounds = array<i64: 256, 3>}]} {
    %c0 = arith.constant 0 : index
    %c0_0 = arith.constant 0 : index
    %0 = vector.load %arg2[%c0, %c0_0] : memref<3x3xf32, #tpu.memory_space<vmem>>, vector<3x3xf32>
    %c0_1 = arith.constant 0 : index
    %c0_2 = arith.constant 0 : index
    %1 = vector.load %arg1[%c0_1, %c0_2] : memref<256x3xf32, #tpu.memory_space<vmem>>, vector<256x3xf32>
    %cst = arith.constant dense<0.000000e+00> : vector<3x256xf32>
    %2 = tpu.matmul %0, %1, %cst {dimension_numbers = #tpu.dot_dimension_numbers<[1], [1], [0], [0], [0, 0, 1, 0], [], []>} : vector<3x3xf32>, vector<256x3xf32>, vector<3x256xf32> -> vector<3x256xf32>
    %3 = vector.extract_strided_slice %2 {offsets = [0, 0], sizes = [2, 256], strides = [1, 1]} : vector<3x256xf32> to vector<2x256xf32>
    %c0_3 = arith.constant 0 : index
    %c0_4 = arith.constant 0 : index
    %4 = vector.load %arg10[%c0_3, %c0_4] : memref<10x256xf32, #tpu.memory_space<vmem>>, vector<2x256xf32>
    tpu.vector_store %arg10[%c0_3, %c0_4], %3 {strides = array<i32>} : memref<10x256xf32, #tpu.memory_space<vmem>>, vector<2x256xf32>,
    %5 = vector.extract_strided_slice %2 {offsets = [2, 0], sizes = [1, 256], strides = [1, 1]} : vector<3x256xf32> to vector<1x256xf32>
    %cst_5 = arith.constant 6.28318548 : f32
    %6 = vector.broadcast %cst_5 : f32 to vector<1x256xf32>
    %7 = arith.mulf %6, %5 : vector<1x256xf32>
    %8 = math.cos %7 : vector<1x256xf32>
    %9 = math.sin %7 : vector<1x256xf32>
    %cst_6 = arith.constant 1.000000e+00 : f32
    %10 = vector.broadcast %cst_6 : f32 to vector<1x256xf32>
    %c2 = arith.constant 2 : index
    %c0_7 = arith.constant 0 : index
    %11 = vector.load %arg10[%c2, %c0_7] : memref<10x256xf32, #tpu.memory_space<vmem>>, vector<1x256xf32>
    tpu.vector_store %arg10[%c2, %c0_7], %10 {strides = array<i32>} : memref<10x256xf32, #tpu.memory_space<vmem>>, vector<1x256xf32>,
    %c3 = arith.constant 3 : index
    %c0_8 = arith.constant 0 : index
    %12 = vector.load %arg10[%c3, %c0_8] : memref<10x256xf32, #tpu.memory_space<vmem>>, vector<1x256xf32>
    tpu.vector_store %arg10[%c3, %c0_8], %8 {strides = array<i32>} : memref<10x256xf32, #tpu.memory_space<vmem>>, vector<1x256xf32>,
    %c6 = arith.constant 6 : index
    %c0_9 = arith.constant 0 : index
    %13 = vector.load %arg10[%c6, %c0_9] : memref<10x256xf32, #tpu.memory_space<vmem>>, vector<1x256xf32>
    tpu.vector_store %arg10[%c6, %c0_9], %9 {strides = array<i32>} : memref<10x256xf32, #tpu.memory_space<vmem>>, vector<1x256xf32>,
    %cst_10 = arith.constant 2.000000e+00 : f32
    %14 = vector.broadcast %cst_10 : f32 to vector<1x256xf32>
    %15 = arith.mulf %14, %8 : vector<1x256xf32>
    %cst_11 = arith.constant 0.000000e+00 : f32
    %16 = vector.broadcast %cst_11 : f32 to vector<1x256xf32>
    %17 = arith.mulf %15, %8 : vector<1x256xf32>
    %18 = arith.subf %17, %10 : vector<1x256xf32>
    %19 = arith.mulf %15, %9 : vector<1x256xf32>
    %20 = arith.subf %19, %16 : vector<1x256xf32>
    %c4 = arith.constant 4 : index
    %c0_12 = arith.constant 0 : index
    %21 = vector.load %arg10[%c4, %c0_12] : memref<10x256xf32, #tpu.memory_space<vmem>>, vector<1x256xf32>
    tpu.vector_store %arg10[%c4, %c0_12], %18 {strides = array<i32>} : memref<10x256xf32, #tpu.memory_space<vmem>>, vector<1x256xf32>,
    %c7 = arith.constant 7 : index
    %c0_13 = arith.constant 0 : index
    %22 = vector.load %arg10[%c7, %c0_13] : memref<10x256xf32, #tpu.memory_space<vmem>>, vector<1x256xf32>
    tpu.vector_store %arg10[%c7, %c0_13], %20 {strides = array<i32>} : memref<10x256xf32, #tpu.memory_space<vmem>>, vector<1x256xf32>,
    %23 = arith.mulf %15, %18 : vector<1x256xf32>
    %24 = arith.subf %23, %8 : vector<1x256xf32>
    %25 = arith.mulf %15, %20 : vector<1x256xf32>
    %26 = arith.subf %25, %9 : vector<1x256xf32>
    %c5 = arith.constant 5 : index
    %c0_14 = arith.constant 0 : index
    %27 = vector.load %arg10[%c5, %c0_14] : memref<10x256xf32, #tpu.memory_space<vmem>>, vector<1x256xf32>
    tpu.vector_store %arg10[%c5, %c0_14], %24 {strides = array<i32>} : memref<10x256xf32, #tpu.memory_space<vmem>>, vector<1x256xf32>,
    %c8 = arith.constant 8 : index
    %c0_15 = arith.constant 0 : index
    %28 = vector.load %arg10[%c8, %c0_15] : memref<10x256xf32, #tpu.memory_space<vmem>>, vector<1x256xf32>
    tpu.vector_store %arg10[%c8, %c0_15], %26 {strides = array<i32>} : memref<10x256xf32, #tpu.memory_space<vmem>>, vector<1x256xf32>,
    %29 = arith.mulf %15, %26 : vector<1x256xf32>
    %30 = arith.subf %29, %20 : vector<1x256xf32>
    %c9 = arith.constant 9 : index
    %c0_16 = arith.constant 0 : index
    %31 = vector.load %arg10[%c9, %c0_16] : memref<10x256xf32, #tpu.memory_space<vmem>>, vector<1x256xf32>
    tpu.vector_store %arg10[%c9, %c0_16], %30 {strides = array<i32>} : memref<10x256xf32, #tpu.memory_space<vmem>>, vector<1x256xf32>,
    %c0_17 = arith.constant 0 : index
    %c0_18 = arith.constant 0 : index
    %32 = vector.load %arg10[%c0_17, %c0_18] : memref<10x256xf32, #tpu.memory_space<vmem>>, vector<10x256xf32>
    %c0_19 = arith.constant 0 : index
    %c0_20 = arith.constant 0 : index
    %33 = vector.load %arg3[%c0_19, %c0_20] : memref<32x10xf32, #tpu.memory_space<vmem>>, vector<32x10xf32>
    %cst_21 = arith.constant dense<0.000000e+00> : vector<32x256xf32>
    %34 = tpu.matmul %33, %32, %cst_21 {dimension_numbers = #tpu.dot_dimension_numbers<[1], [0], [0], [1], [0, 0, 1, 1], [], []>} : vector<32x10xf32>, vector<10x256xf32>, vector<32x256xf32> -> vector<32x256xf32>
    %c0_22 = arith.constant 0 : index
    %c0_23 = arith.constant 0 : index
    %35 = vector.load %arg4[%c0_22, %c0_23] : memref<32x1xf32, #tpu.memory_space<vmem>>, vector<32x1xf32>
    %36 = vector.broadcast %35 : vector<32x1xf32> to vector<32x256xf32>
    %37 = arith.addf %34, %36 : vector<32x256xf32>
    %38 = math.tanh %37 : vector<32x256xf32>
    %c0_24 = arith.constant 0 : index
    %c0_25 = arith.constant 0 : index
    %c0_26 = arith.constant 0 : index
    %39 = vector.load %arg5[%c0_24, %c0_25, %c0_26] : memref<2x32x32xf32, #tpu.memory_space<vmem>>, vector<1x32x32xf32>
    %40 = vector.shape_cast %39 : vector<1x32x32xf32> to vector<32x32xf32>
    %cst_27 = arith.constant dense<0.000000e+00> : vector<32x256xf32>
    %41 = tpu.matmul %40, %38, %cst_27 {dimension_numbers = #tpu.dot_dimension_numbers<[1], [0], [0], [1], [0, 0, 1, 1], [], []>} : vector<32x32xf32>, vector<32x256xf32>, vector<32x256xf32> -> vector<32x256xf32>
    %c0_28 = arith.constant 0 : index
    %c0_29 = arith.constant 0 : index
    %c0_30 = arith.constant 0 : index
    %42 = vector.load %arg6[%c0_28, %c0_29, %c0_30] : memref<2x32x1xf32, #tpu.memory_space<vmem>>, vector<1x32x1xf32>
    %43 = vector.shape_cast %42 : vector<1x32x1xf32> to vector<32x1xf32>
    %44 = vector.broadcast %43 : vector<32x1xf32> to vector<32x256xf32>
    %45 = arith.addf %41, %44 : vector<32x256xf32>
    %46 = math.tanh %45 : vector<32x256xf32>
    %c1 = arith.constant 1 : index
    %c0_31 = arith.constant 0 : index
    %c0_32 = arith.constant 0 : index
    %47 = vector.load %arg5[%c1, %c0_31, %c0_32] : memref<2x32x32xf32, #tpu.memory_space<vmem>>, vector<1x32x32xf32>
    %48 = vector.shape_cast %47 : vector<1x32x32xf32> to vector<32x32xf32>
    %cst_33 = arith.constant dense<0.000000e+00> : vector<32x256xf32>
    %49 = tpu.matmul %48, %46, %cst_33 {dimension_numbers = #tpu.dot_dimension_numbers<[1], [0], [0], [1], [0, 0, 1, 1], [], []>} : vector<32x32xf32>, vector<32x256xf32>, vector<32x256xf32> -> vector<32x256xf32>
    %c1_34 = arith.constant 1 : index
    %c0_35 = arith.constant 0 : index
    %c0_36 = arith.constant 0 : index
    %50 = vector.load %arg6[%c1_34, %c0_35, %c0_36] : memref<2x32x1xf32, #tpu.memory_space<vmem>>, vector<1x32x1xf32>
    %51 = vector.shape_cast %50 : vector<1x32x1xf32> to vector<32x1xf32>
    %52 = vector.broadcast %51 : vector<32x1xf32> to vector<32x256xf32>
    %53 = arith.addf %49, %52 : vector<32x256xf32>
    %54 = math.tanh %53 : vector<32x256xf32>
    %c0_37 = arith.constant 0 : index
    %c0_38 = arith.constant 0 : index
    %55 = vector.load %arg7[%c0_37, %c0_38] : memref<32x3xf32, #tpu.memory_space<vmem>>, vector<32x3xf32>
    %cst_39 = arith.constant dense<0.000000e+00> : vector<256x3xf32>
    %56 = tpu.matmul %54, %55, %cst_39 {dimension_numbers = #tpu.dot_dimension_numbers<[0], [0], [1], [1], [0, 1, 1, 1], [], []>} : vector<32x256xf32>, vector<32x3xf32>, vector<256x3xf32> -> vector<256x3xf32>
    %c0_40 = arith.constant 0 : index
    %c0_41 = arith.constant 0 : index
    %57 = vector.load %arg8[%c0_40, %c0_41] : memref<1x3xf32, #tpu.memory_space<vmem>>, vector<1x3xf32>
    %58 = vector.broadcast %57 : vector<1x3xf32> to vector<256x3xf32>
    %59 = arith.addf %56, %58 : vector<256x3xf32>
    %c0_42 = arith.constant 0 : index
    %c0_43 = arith.constant 0 : index
    %60 = vector.load %arg9[%c0_42, %c0_43] : memref<256x3xf32, #tpu.memory_space<vmem>>, vector<256x3xf32>
    tpu.vector_store %arg9[%c0_42, %c0_43], %59 {strides = array<i32>} : memref<256x3xf32, #tpu.memory_space<vmem>>, vector<256x3xf32>,
    return
  }
  func.func @transform_0(%arg0: i32) -> (i32, i32) {
    %c0_i32 = arith.constant 0 : i32
    %c0_i32_0 = arith.constant 0 : i32
    return %arg0, %c0_i32 : i32, i32
  }
  func.func @transform_1(%arg0: i32) -> (i32, i32) {
    %c0_i32 = arith.constant 0 : i32
    %c0_i32_0 = arith.constant 0 : i32
    %c0_i32_1 = arith.constant 0 : i32
    return %c0_i32, %c0_i32_0 : i32, i32
  }
  func.func @transform_2(%arg0: i32) -> (i32, i32) {
    %c0_i32 = arith.constant 0 : i32
    %c0_i32_0 = arith.constant 0 : i32
    %c0_i32_1 = arith.constant 0 : i32
    return %c0_i32, %c0_i32_0 : i32, i32
  }
  func.func @transform_3(%arg0: i32) -> (i32, i32) {
    %c0_i32 = arith.constant 0 : i32
    %c0_i32_0 = arith.constant 0 : i32
    %c0_i32_1 = arith.constant 0 : i32
    return %c0_i32, %c0_i32_0 : i32, i32
  }
  func.func @transform_4(%arg0: i32) -> (i32, i32, i32) {
    %c0_i32 = arith.constant 0 : i32
    %c0_i32_0 = arith.constant 0 : i32
    %c0_i32_1 = arith.constant 0 : i32
    %c0_i32_2 = arith.constant 0 : i32
    return %c0_i32, %c0_i32_0, %c0_i32_1 : i32, i32, i32
  }
  func.func @transform_5(%arg0: i32) -> (i32, i32, i32) {
    %c0_i32 = arith.constant 0 : i32
    %c0_i32_0 = arith.constant 0 : i32
    %c0_i32_1 = arith.constant 0 : i32
    %c0_i32_2 = arith.constant 0 : i32
    return %c0_i32, %c0_i32_0, %c0_i32_1 : i32, i32, i32
  }
  func.func @transform_6(%arg0: i32) -> (i32, i32) {
    %c0_i32 = arith.constant 0 : i32
    %c0_i32_0 = arith.constant 0 : i32
    %c0_i32_1 = arith.constant 0 : i32
    return %c0_i32, %c0_i32_0 : i32, i32
  }
  func.func @transform_7(%arg0: i32) -> (i32, i32) {
    %c0_i32 = arith.constant 0 : i32
    %c0_i32_0 = arith.constant 0 : i32
    %c0_i32_1 = arith.constant 0 : i32
    return %c0_i32, %c0_i32_0 : i32, i32
  }
  func.func @transform_8(%arg0: i32) -> (i32, i32) {
    %c0_i32 = arith.constant 0 : i32
    %c0_i32_0 = arith.constant 0 : i32
    return %arg0, %c0_i32 : i32, i32
  }
}

</mosaic_0001>

<bundles_post_ra>
// kernel: tpu_custom_call.1
= control target key start
LH: loop header
LB: loop body
LE: loop exit
PB: predicated region body
PF: predicated region fallthrough
CT: control target
= control target key end

     0   :  { %s2420_s27 = smov 0   ;;  %s2876_s0 = inlined_call_operand.vmem [shape: f32[1024,3], index: 0, kind: input, shape index: {}]   ;;  %s2877_s1 = inlined_call_operand.vmem [shape: f32[3,3], index: 1, kind: input, shape index: {}]   ;;  %s2878_s2 = inlined_call_operand.vmem [shape: f32[32,10], index: 2, kind: input, shape index: {}]   ;;  %s2879_s3 = inlined_call_operand.vmem [shape: f32[32,1], index: 3, kind: input, shape index: {}]   ;;  %s2880_s4 = inlined_call_operand.vmem [shape: f32[2,32,32], index: 4, kind: input, shape index: {}]   ;;  %s2881_s5 = inlined_call_operand.vmem [shape: f32[2,32,1], index: 5, kind: input, shape index: {}]   ;;  %s2882_s6 = inlined_call_operand.vmem [shape: f32[32,3], index: 6, kind: input, shape index: {}]   ;;  %s2883_s7 = inlined_call_operand.vmem [shape: f32[1,3], index: 7, kind: input, shape index: {}]   ;;  %s2884_s8 = inlined_call_operand.vmem [shape: f32[1024,3], index: 8, kind: output, shape index: {}]  }
   0x1 LB: > { %s2022_s28 = sadd.s32 4294967295, %s2363_s27   ;;  %p2026_p0 = scmp.ge.s32.totalorder %s2363_s27, 1  ;;  %s2363_s27 = sphi %s2420_s27, %s18_s27  }
   0x2   : > { %p263_p1 = scmp.lt.s32.totalorder %s2363_s27, 5 }
   0x4   : > { %p264_p2 = pnand %p2026_p0, %p263_p1 }
   0x5   : > { %s2027_s29 = sshll.u32 (!%p264_p2), %s2022_s28, 5 }
   0x6   : > { %267 = sbr.rel (%p264_p2) target bundleno = 1486 (0x5ce), region = 52  ;;  %p298_p3 = scmp.lt.s32.totalorder (!%p264_p2), %s2027_s29, 127 }
   0xb   : > { %vm342_vm0 = vcmask 23552   ;;  %v2431_v0 = vld [vmem:[%s2877_s1] sm:$0x7]  ;;  %s2888_s29 = smov (!%p298_p3, %s2027_s29), 127  ;;  %v931_v33 = vlaneseq  ;;  %v2365_v35 = vmov 1.0   ;;  %v2366_v43 = vmov 0.0  }
   0xc   : > { %2171 = vmatprep.mubr.msk.f32.mxu0 %vm342_vm0, %v2431_v0  ;;  %s2028_s10 = sshll.u32 %s2888_s29, 3  ;;  %1228 = vmatprep.mubr.f32.mxu1 %v2366_v43  ;;  %v2367_v60 = vmov 683565275   ;;  %v2368_v62 = vmov 2475754826   ;;  %v1117_v34 = vld [vmem:[%s2878_s2 + $0x8] sm:$0xff] }
   0xd   : > { %s2443_s13 = scalar_lea.vmem %s2876_s0, %s2028_s10  ;;  %vm2512_vm1 = vcmp.lt.s32.totalorder %v931_v33, 256  ;;  %s2775_s17 = scalar_lea.vmem %s2884_s8, %s2028_s10 }
   0xe   : > { %v341_v1 = vld [vmem:[%s2443_s13 + $0xf8] sm:$0xff]  ;;  %v340_v3 = vld [vmem:[%s2443_s13 + $0xf0] sm:$0xff]  ;;  %v339_v5 = vld [vmem:[%s2443_s13 + $0xe8] sm:$0xff]  ;;  %936 = vst.msk [vmem:[#allocation2 + $0x2] ss:$8 sm:$0x3] %vm2512_vm1, %v2365_v35 }
   0xf   : > { %v325_v2 = vld [vmem:[%s2443_s13 + $0x78] sm:$0xff]  ;;  %2139 = vmatprep.subr.msk.mxu0 %vm342_vm0, %v341_v1  ;;  %v324_v4 = vld [vmem:[%s2443_s13 + $0x70] sm:$0xff]  ;;  %v323_v6 = vld [vmem:[%s2443_s13 + $0x68] sm:$0xff] }
  0x10   : > { %2140 = vmatpush3.xpose.msk.msra.mxu0 %vm342_vm0, %v325_v2  ;;  %v338_v7 = vld [vmem:[%s2443_s13 + $0xe0] sm:$0xff]  ;;  %v337_v9 = vld [vmem:[%s2443_s13 + $0xd8] sm:$0xff]  ;;  %v336_v11 = vld [vmem:[%s2443_s13 + $0xd0] sm:$0xff]  ;;  %v2370_v2 = vmov 2102212464  }
  0x11   : > { %2141 = vmatprep.subr.msk.mxu0 %vm342_vm0, %v340_v3  ;;  %v322_v8 = vld [vmem:[%s2443_s13 + $0x60] sm:$0xff]  ;;  %v321_v10 = vld [vmem:[%s2443_s13 + $0x58] sm:$0xff]  ;;  %v320_v12 = vld [vmem:[%s2443_s13 + $0x50] sm:$0xff] }
  0x12   : > { %v335_v13 = vld [vmem:[%s2443_s13 + $0xc8] sm:$0xff]  ;;  %v334_v15 = vld [vmem:[%s2443_s13 + $0xc0] sm:$0xff]  ;;  %v333_v17 = vld [vmem:[%s2443_s13 + $0xb8] sm:$0xff] }
  0x13   : > { %v319_v14 = vld [vmem:[%s2443_s13 + $0x48] sm:$0xff]  ;;  %v318_v16 = vld [vmem:[%s2443_s13 + $0x40] sm:$0xff]  ;;  %v317_v18 = vld [vmem:[%s2443_s13 + $0x38] sm:$0xff] }
  0x14   : > { %2142 = vmatpush3.xpose.msk.msra.mxu0 %vm342_vm0, %v324_v4  ;;  %v332_v19 = vld [vmem:[%s2443_s13 + $0xb0] sm:$0xff]  ;;  %v331_v21 = vld [vmem:[%s2443_s13 + $0xa8] sm:$0xff]  ;;  %v330_v23 = vld [vmem:[%s2443_s13 + $0xa0] sm:$0xff]  ;;  %v2371_v4 = vmov 920167782  }
  0x15   : > { %2143 = vmatprep.subr.msk.mxu0 %vm342_vm0, %v339_v5  ;;  %v316_v20 = vld [vmem:[%s2443_s13 + $0x30] sm:$0xff]  ;;  %v315_v22 = vld [vmem:[%s2443_s13 + $0x28] sm:$0xff]  ;;  %v314_v24 = vld [vmem:[%s2443_s13 + $0x20] sm:$0xff] }
  0x16   : > { %v329_v25 = vld [vmem:[%s2443_s13 + $0x98] sm:$0xff]  ;;  %v328_v27 = vld [vmem:[%s2443_s13 + $0x90] sm:$0xff]  ;;  %v327_v29 = vld [vmem:[%s2443_s13 + $0x88] sm:$0xff] }
  0x17   : > { %v313_v26 = vld [vmem:[%s2443_s13 + $0x18] sm:$0xff]  ;;  %v312_v28 = vld [vmem:[%s2443_s13 + $0x10] sm:$0xff]  ;;  %v311_v30 = vld [vmem:[%s2443_s13 + $0x8] sm:$0xff] }
  0x18   : > { %2144 = vmatpush3.xpose.msk.msra.mxu0 %vm342_vm0, %v323_v6  ;;  %v326_v31 = vld [vmem:[%s2443_s13 + $0x80] sm:$0xff] }
  0x19   : > { %2145 = vmatprep.subr.msk.mxu0 %vm342_vm0, %v338_v7  ;;  %v310_v32 = vld [vmem:[%s2443_s13] sm:$0xff] }
  0x1c   : > { %2146 = vmatpush3.xpose.msk.msra.mxu0 %vm342_vm0, %v322_v8 }
  0x1d   : > { %2147 = vmatprep.subr.msk.mxu0 %vm342_vm0, %v337_v9 }
  0x20   : > { %2148 = vmatpush3.xpose.msk.msra.mxu0 %vm342_vm0, %v321_v10 }
  0x21   : > { %2149 = vmatprep.subr.msk.mxu0 %vm342_vm0, %v336_v11  ;;  %v2372_v11 = vmov 1326507024  }
  0x24   : > { %2150 = vmatpush3.xpose.msk.msra.mxu0 %vm342_vm0, %v320_v12 }
  0x25   : > { %2151 = vmatprep.subr.msk.mxu0 %vm342_vm0, %v335_v13 }
  0x28   : > { %2152 = vmatpush3.xpose.msk.msra.mxu0 %vm342_vm0, %v319_v14 }
  0x29   : > { %2153 = vmatprep.subr.msk.mxu0 %vm342_vm0, %v334_v15 }
  0x2c   : > { %2154 = vmatpush3.xpose.msk.msra.mxu0 %vm342_vm0, %v318_v16 }
  0x2d   : > { %2155 = vmatprep.subr.msk.mxu0 %vm342_vm0, %v333_v17 }
  0x30   : > { %2156 = vmatpush3.xpose.msk.msra.mxu0 %vm342_vm0, %v317_v18 }
  0x31   : > { %2157 = vmatprep.subr.msk.mxu0 %vm342_vm0, %v332_v19 }
  0x34   : > { %2158 = vmatpush3.xpose.msk.msra.mxu0 %vm342_vm0, %v316_v20 }
  0x35   : > { %2159 = vmatprep.subr.msk.mxu0 %vm342_vm0, %v331_v21 }
  0x38   : > { %2160 = vmatpush3.xpose.msk.msra.mxu0 %vm342_vm0, %v315_v22 }
  0x39   : > { %2161 = vmatprep.subr.msk.mxu0 %vm342_vm0, %v330_v23 }
  0x3c   : > { %2162 = vmatpush3.xpose.msk.msra.mxu0 %vm342_vm0, %v314_v24 }
  0x3d   : > { %2163 = vmatprep.subr.msk.mxu0 %vm342_vm0, %v329_v25 }
  0x40   : > { %2164 = vmatpush3.xpose.msk.msra.mxu0 %vm342_vm0, %v313_v26 }
  0x41   : > { %2165 = vmatprep.subr.msk.mxu0 %vm342_vm0, %v328_v27 }
  0x44   : > { %2166 = vmatpush3.xpose.msk.msra.mxu0 %vm342_vm0, %v312_v28 }
  0x45   : > { %2167 = vmatprep.subr.msk.mxu0 %vm342_vm0, %v327_v29 }
  0x48   : > { %2168 = vmatpush3.xpose.msk.msra.mxu0 %vm342_vm0, %v311_v30 }
  0x49   : > { %2169 = vmatprep.subr.msk.mxu0 %vm342_vm0, %v326_v31 }
  0x4c   : > { %2170 = vmatpush3.xpose.msk.msra.mxu0 %vm342_vm0, %v310_v32 }
  0x4f   : > { %2172 = vmatmul.mubr.msk.f32.vlgmr.msra.gmra.mxu0 %vm342_vm0, %v2431_v0  ;;  %v2369_v0 = vmov 2131351028  }
 0x10f   : > { %v508_v36 = vpop.f32.mrf.mxu0 }
 0x110   : > { %513 = vst [vmem:[#allocation2] sm:$0x3] %v508_v36  ;;  %v2518_v37 = vmul.f32 6.2831855, %v508_v36 }
 0x111   : > { %v510_v38 = vpop.f32.mrf.mxu0 }
 0x112   : > { %v517_v39 = vand.u32 2147483647, %v2518_v37  ;;  %v520_v40 = vand.u32 2139095040, %v2518_v37  ;;  %514 = vst [vmem:[#allocation2 + $0x8] sm:$0x3] %v510_v38 }
 0x113   : > { %v2522_v41 = vmul.f32 6.2831855, %v510_v38 }
 0x114   : > { %v521_v42 = vshrl.u32 %v520_v40, 23  ;;  %v524_v44 = vand.u32 8388607, %v517_v39 }
 0x115   : > { %v620_v45 = vand.u32 2147483647, %v2522_v41  ;;  %v623_v46 = vand.u32 2139095040, %v2522_v41 }
 0x116   : > { %v2064_v47 = vadd.s32 4294967169, %v521_v42  ;;  %v525_v50 = vor.u32 8388608, %v524_v44 }
 0x117   : > { %v624_v48 = vshrl.u32 %v623_v46, 23  ;;  %v627_v52 = vand.u32 8388607, %v620_v45 }
 0x118   : > { %v527_v49 = vadd.s32 1, %v2064_v47  ;;  %v2531_v57 = vshll.u32 %v525_v50, 8 }
 0x119   : > { %v2068_v51 = vadd.s32 4294967169, %v624_v48  ;;  %v628_v58 = vor.u32 8388608, %v627_v52 }
 0x11a   : > { %vm528_vm2 = vcmp.gt.s32.totalorder %v527_v49, 0 }
 0x11b   : > { %v529_v53 = vsel %vm528_vm2, %v527_v49, 0  ;;  %v630_v54 = vadd.s32 1, %v2068_v51  ;;  %v2543_v31 = vshll.u32 %v628_v58, 8  ;;  %vm519_vm2 = vcmp.lt.s32.totalorder %v2518_v37, 0 }
 0x11c   : > { %v530_v55 = vshrl.u32 %v529_v53, 5  ;;  %v531_v56 = vand.u32 31, %v529_v53 }
 0x11d   : > { %vm631_vm3 = vcmp.gt.s32.totalorder %v630_v54, 0 }
 0x11e   : > { %v532_v59 = vsub.s32 32, %v531_v56  ;;  %v534_v61 = vshll.u32 %v2367_v60, %v531_v56  ;;  %v537_v63 = vshll.u32 %v2368_v62, %v531_v56  ;;  %v540_v1 = vshll.u32 %v2369_v0, %v531_v56 }
 0x11f   : > { %v543_v3 = vshll.u32 %v2370_v2, %v531_v56  ;;  %v546_v5 = vshll.u32 %v2371_v4, %v531_v56  ;;  %vm549_vm4 = vcmp.lt.s32.totalorder %v530_v55, 1  ;;  %vm550_vm5 = vcmp.lt.s32.totalorder %v530_v55, 2 }
 0x120   : > { %v535_v6 = vshrl.u32 %v2368_v62, %v532_v59  ;;  %v538_v7 = vshrl.u32 %v2369_v0, %v532_v59  ;;  %v541_v8 = vshrl.u32 %v2370_v2, %v532_v59  ;;  %v533_v9 = vshrl.u32 %v2367_v60, %v532_v59 }
 0x121   : > { %v544_v10 = vshrl.u32 %v2371_v4, %v532_v59  ;;  %v547_v12 = vshrl.u32 %v2372_v11, %v532_v59  ;;  %vm551_vm6 = vcmp.lt.s32.totalorder %v530_v55, 3  ;;  %v632_v16 = vsel %vm631_vm3, %v630_v54, 0 }
 0x122   : > { %v536_v13 = vor.u32 %v535_v6, %v534_v61  ;;  %v539_v14 = vor.u32 %v538_v7, %v537_v63  ;;  %v542_v15 = vor.u32 %v541_v8, %v540_v1  ;;  %vm552_vm7 = vcmp.lt.s32.totalorder %v530_v55, 4  ;;  %v1123_v7 = vld [vmem:[%s2879_s3 + $0x18] sm:$0xff] }
 0x123   : > { %v545_v17 = vor.u32 %v544_v10, %v543_v3  ;;  %v548_v18 = vor.u32 %v547_v12, %v546_v5  ;;  %v634_v19 = vand.u32 31, %v632_v16  ;;  %v633_v36 = vshrl.u32 %v632_v16, 5 }
 0x124   : > { %v553_v20 = vsel %vm549_vm4, %v533_v9, %v536_v13  ;;  %v554_v21 = vsel %vm552_vm7, %v542_v15, 2102212464  ;;  %v557_v22 = vsel %vm549_vm4, %v536_v13, %v539_v14  ;;  %v561_v23 = vsel %vm549_vm4, %v539_v14, %v542_v15 }
 0x125   : > { %v555_v24 = vsel %vm551_vm6, %v539_v14, %v554_v21  ;;  %v558_v25 = vsel %vm552_vm7, %v545_v17, 920167782  ;;  %v562_v26 = vsel %vm552_vm7, %v548_v18, 1326507024  ;;  %v635_v27 = vsub.s32 32, %v634_v19 }
 0x126   : > { %v556_v28 = vsel %vm550_vm5, %v553_v20, %v555_v24  ;;  %v559_v29 = vsel %vm551_vm6, %v542_v15, %v558_v25  ;;  %v563_v30 = vsel %vm551_vm6, %v545_v17, %v562_v26  ;;  %v637_v38 = vshll.u32 %v2367_v60, %v634_v19 }
 0x127   : > { %v560_v32 = vsel %vm550_vm5, %v557_v22, %v559_v29  ;;  %v564_v35 = vsel %vm550_vm5, %v561_v23, %v563_v30  ;;  %v572_v47 = vmul.u32 %v2531_v57, %v556_v28  ;;  %v638_v48 = vshrl.u32 %v2368_v62, %v635_v27  ;;  %v1122_v22 = vld [vmem:[%s2879_s3 + $0x10] sm:$0xff]  ;;  %v1120_v23 = vld [vmem:[%s2879_s3] sm:$0xff]  ;;  %v1268_v29 = vld [vmem:[%s2881_s5 + $0x18] sm:$0xff] }
 0x128   : > { %v2549_v40 = vmul.u32.u64.low %v2531_v57, %v564_v35  ;;  %v2550_v42 = vmul.u32.u64.high %v2531_v57, %v564_v35, %v2549_v40  ;;  %v2553_v44 = vmul.u32.u64.low %v2531_v57, %v560_v32  ;;  %v2554_v46 = vmul.u32.u64.high %v2531_v57, %v560_v32, %v2553_v44  ;;  %v1267_v30 = vld [vmem:[%s2881_s5 + $0x10] sm:$0xff] }
 0x129   : > { %v640_v49 = vshll.u32 %v2368_v62, %v634_v19  ;;  %v641_v50 = vshrl.u32 %v2369_v0, %v635_v27  ;;  %v643_v51 = vshll.u32 %v2369_v0, %v634_v19  ;;  %v644_v52 = vshrl.u32 %v2370_v2, %v635_v27  ;;  %v1265_v40 = vld [vmem:[%s2881_s5] sm:$0xff] }
 0x12a   : > { %v646_v53 = vshll.u32 %v2370_v2, %v634_v19  ;;  %v647_v54 = vshrl.u32 %v2371_v4, %v635_v27  ;;  %v639_v55 = vor.u32 %v638_v48, %v637_v38  ;;  %v649_v58 = vshll.u32 %v2371_v4, %v634_v19 }
 0x12b   : > { %v642_v56 = vor.u32 %v641_v50, %v640_v49  ;;  %v650_v59 = vshrl.u32 %v2372_v11, %v635_v27  ;;  %vm574_vm8 = vc.u32 %v2550_v42, %v2553_v44  ;;  %v575_v61 = vadd.s32 1, %v2554_v46  ;;  %v2096_v50 = vld [vmem:[%s2881_s5 + $0x20] sm:$0xff] }
 0x12c   : > { %v636_v63 = vshrl.u32 %v2367_v60, %v635_v27  ;;  %v645_v1 = vor.u32 %v644_v52, %v643_v51  ;;  %v648_v57 = vor.u32 %v647_v54, %v646_v53  ;;  %vm652_vm9 = vcmp.lt.s32.totalorder %v633_v36, 1  ;;  %v1121_v60 = vld [vmem:[%s2879_s3 + $0x8] sm:$0xff] }
 0x12d   : > { %v651_v3 = vor.u32 %v650_v59, %v649_v58  ;;  %vm653_vm10 = vcmp.lt.s32.totalorder %v633_v36, 2  ;;  %v576_v62 = vsel %vm574_vm8, %v575_v61, %v2554_v46  ;;  %vm654_vm11 = vcmp.lt.s32.totalorder %v633_v36, 3  ;;  %v2097_v51 = vld [vmem:[%s2881_s5 + $0x28] sm:$0xff]  ;;  %v2098_v59 = vld [vmem:[%s2881_s5 + $0x30] sm:$0xff]  ;;  %v2099_v61 = vld [vmem:[%s2881_s5 + $0x38] sm:$0xff] }
 0x12e   : > { %vm655_vm12 = vcmp.lt.s32.totalorder %v633_v36, 4  ;;  %v660_v0 = vsel %vm652_vm9, %v639_v55, %v642_v56  ;;  %v577_v2 = vadd.s32 %v576_v62, %v572_v47  ;;  %v664_v6 = vsel %vm652_vm9, %v642_v56, %v645_v1 }
 0x12f   : > { %v657_v4 = vsel %vm655_vm12, %v645_v1, 2102212464  ;;  %v661_v5 = vsel %vm655_vm12, %v648_v57, 920167782  ;;  %v656_v8 = vsel %vm652_vm9, %v636_v63, %v639_v55  ;;  %v665_v10 = vsel %vm655_vm12, %v651_v3, 1326507024 }
 0x130   : > { %v662_v9 = vsel %vm654_vm11, %v645_v1, %v661_v5  ;;  %v578_v11 = vadd.s32 536870912, %v577_v2  ;;  %v658_v12 = vsel %vm654_vm11, %v642_v56, %v657_v4  ;;  %v666_v14 = vsel %vm654_vm11, %v648_v57, %v665_v10 }
 0x131   : > { %v663_v13 = vsel %vm653_vm10, %v660_v0, %v662_v9  ;;  %v2373_v15 = vmov 0   ;;  %v667_v16 = vsel %vm653_vm10, %v664_v6, %v666_v14  ;;  %v659_v24 = vsel %vm653_vm10, %v656_v8, %v658_v12 }
 0x132   : > { %2299 = vset.pattern.permute.xlu0 %v2373_v15  ;;  %2300 = vset.pattern.permute.xlu1 %v2373_v15  ;;  %v2572_v17 = vmul.u32.u64.low %v2543_v31, %v663_v13  ;;  %v2573_v18 = vmul.u32.u64.high %v2543_v31, %v663_v13, %v2572_v17  ;;  %v2576_v19 = vshrl.u32 %v578_v11, 30  ;;  %v675_v28 = vmul.u32 %v2543_v31, %v659_v24 }
 0x133   : > { %1141 = vperm.xlu0 %2299, %v1123_v7   ;;  %1131 = vperm.xlu1 %2300, %v1121_v60   ;;  %v2579_v20 = vmul.u32.u64.low %v2543_v31, %v667_v16  ;;  %v2580_v21 = vmul.u32.u64.high %v2543_v31, %v667_v16, %v2579_v20  ;;  %v1266_v31 = vld [vmem:[%s2881_s5 + $0x8] sm:$0xff]  ;;  %v573_v55 = vadd.s32 %v2553_v44, %v2550_v42  ;;  %vm518_vm3 = vcmp.le.f32.partialorder %v517_v39, 0.7853982 }
 0x134   : > { %v580_v25 = vshll.u32 %v2576_v19, 30  ;;  %v678_v26 = vadd.s32 1, %v2573_v18  ;;  %vm622_vm4 = vcmp.lt.s32.totalorder %v2522_v41, 0  ;;  %vm621_vm5 = vcmp.le.f32.partialorder %v620_v45, 0.7853982 }
 0x135   : > { %vm677_vm13 = vc.u32 %v2580_v21, %v2572_v17  ;;  %v676_v8 = vadd.s32 %v2572_v17, %v2580_v21  ;;  %vm609_vm8 = vweird.f32 %v2518_v37 }
 0x136   : > { %v581_v27 = vsub.s32 %v577_v2, %v580_v25  ;;  %v679_v32 = vsel %vm677_vm13, %v678_v26, %v2573_v18 }
 0x137   : > { %1136 = vperm.xlu0 %2299, %v1122_v22   ;;  %1126 = vperm.xlu1 %2300, %v1120_v23   ;;  %v680_v36 = vadd.s32 %v679_v32, %v675_v28  ;;  %v603_v22 = vsub.s32 4, %v2576_v19 }
 0x138   : > { %v583_v35 = vsub.s32 0, %v581_v27 }
 0x139   : > { %v681_v46 = vadd.s32 536870912, %v680_v36  ;;  %v604_v24 = vsel %vm519_vm2, %v603_v22, %v2576_v19 }
 0x13a   : > { %v2065_v38 = vmin.u32 %v583_v35, %v581_v27  ;;  %v606_v26 = vsel %vm518_vm3, 0, %v604_v24 }
 0x13b   : > { %1286 = vperm.xlu0 %2299, %v1268_v29   ;;  %1281 = vperm.xlu1 %2300, %v1267_v30   ;;  %v2607_v48 = vshrl.u32 %v681_v46, 30  ;;  %v816_v29 = vadd.s32 3, %v606_v26  ;;  %v610_v32 = vand.u32 3, %v606_v26 }
 0x13c   : > { %v585_v47 = vclz %v2065_v38 }
 0x13d   : > { %v683_v52 = vshll.u32 %v2607_v48, 30  ;;  %v706_v39 = vsub.s32 4, %v2607_v48  ;;  %vm615_vm6 = vcmp.eq.s32.totalorder %v610_v32, 2  ;;  %vm612_vm7 = vcmp.eq.s32.totalorder %v610_v32, 0 }
 0x13e   : > { %v2066_v49 = vadd.s32 4294967294, %v585_v47  ;;  %vm611_vm9 = vcmp.lt.s32.totalorder %v610_v32, 2 }
 0x13f   : > { %1276 = vperm.xlu0 %2299, %v1266_v31   ;;  %1271 = vperm.xlu1 %2300, %v1265_v40   ;;  %v684_v54 = vsub.s32 %v680_v36, %v683_v52  ;;  %v707_v35 = vsel %vm622_vm4, %v706_v39, %v2607_v48  ;;  %v817_v31 = vand.u32 3, %v816_v29 }
 0x140   : > { %vm2067_vm14 = vcmp.lt.s32.totalorder %v2066_v49, 0  ;;  %v709_v46 = vsel %vm621_vm5, 0, %v707_v35 }
 0x141   : > { %v588_v53 = vsel %vm2067_vm14, 0, %v2066_v49  ;;  %v686_v63 = vsub.s32 0, %v684_v54  ;;  %vm819_vm10 = vcmp.eq.s32.totalorder %v817_v31, 0  ;;  %vm822_vm11 = vcmp.eq.s32.totalorder %v817_v31, 2 }
 0x142   : > { %v589_v56 = vsub.s32 32, %v588_v53  ;;  %v593_v58 = vsub.s32 4294967266, %v588_v53  ;;  %v590_v1 = vshll.u32 %v581_v27, %v588_v53  ;;  %v2374_v53 = vmov 1966171168  }
 0x143   : > { %1411 = vperm.xlu0 %2299, %v2096_v50   ;;  %1416 = vperm.xlu1 %2300, %v2097_v51   ;;  %v2069_v62 = vmin.u32 %v686_v63, %v684_v54  ;;  %v920_v50 = vadd.s32 3, %v709_v46  ;;  %vm818_vm12 = vcmp.lt.s32.totalorder %v817_v31, 2 }
 0x144   : > { %v591_v57 = vshrl.u32 %v573_v55, %v589_v56  ;;  %v594_v3 = vadd.s32 127, %v593_v58  ;;  %v713_v55 = vand.u32 3, %v709_v46 }
 0x145   : > { %v688_v42 = vclz %v2069_v62  ;;  %v945_v62 = vshrl.u32 %v931_v33, 7 }
 0x146   : > { %v592_v0 = vor.u32 %v591_v57, %v590_v1  ;;  %v595_v2 = vshll.u32 %v594_v3, 23  ;;  %vm714_vm13 = vcmp.lt.s32.totalorder %v713_v55, 2  ;;  %vm718_vm14 = vcmp.eq.s32.totalorder %v713_v55, 2 }
 0x147   : > { %1421 = vperm.xlu0 %2299, %v2098_v59   ;;  %1426 = vperm.xlu1 %2300, %v2099_v61   ;;  %v2070_v4 = vadd.s32 4294967294, %v688_v42  ;;  %v921_v59 = vand.u32 3, %v920_v50 }
 0x148   : > { %v596_v44 = vor.u32 4788187, %v595_v2  ;;  %v599_v6 = vcvt.s32.f32 %v592_v0 }
 0x149   : > { %vm2071_vm15 = vcmp.lt.s32.totalorder %v2070_v4, 0 }
 0x14a   : > { %v597_v5 = vand.u32 2147483647, %v596_v44  ;;  %v691_v60 = vsel %vm2071_vm15, 0, %v2070_v4  ;;  %vm926_vm15 = vcmp.eq.s32.totalorder %v921_v59, 2 }
 0x14b   : > { %v692_v9 = vsub.s32 32, %v691_v60  ;;  %v696_v10 = vsub.s32 4294967266, %v691_v60  ;;  %v693_v12 = vshll.u32 %v684_v54, %v691_v60  ;;  %v942_v54 = vunpack.c.l.s4 %v2374_v53 }
 0x14c   : > { %v600_v7 = vmul.f32 %v599_v6, %v597_v5 }
 0x14d   : > { %v694_v13 = vshrl.u32 %v676_v8, %v692_v9  ;;  %v697_v14 = vadd.s32 127, %v696_v10  ;;  %v943_v63 = vunpack.c.0.s8 %v942_v54 }
 0x14e   : > { %v601_v11 = vxor.u32 2147483648, %v600_v7 }
 0x14f   : > { %v695_v18 = vor.u32 %v694_v13, %v693_v12  ;;  %v698_v20 = vshll.u32 %v697_v14, 23  ;;  %v946_v60 = vsub.s32 %v943_v63, %v945_v62 }
 0x150   : > { %v602_v15 = vsel %vm519_vm2, %v601_v11, %v600_v7  ;;  %vm715_vm2 = vcmp.eq.s32.totalorder %v713_v55, 0 }
 0x151   : > { %v605_v16 = vsel %vm518_vm3, %v2518_v37, %v602_v15  ;;  %v699_v17 = vor.u32 4788187, %v698_v20  ;;  %v702_v23 = vcvt.s32.f32 %v695_v18  ;;  %vm923_vm3 = vcmp.eq.s32.totalorder %v921_v59, 0 }
 0x152   : > { %2301 = vcosq.f32 %v605_v16 }
 0x153   : > { %2303 = vsinq.f32 %v605_v16  ;;  %v700_v21 = vand.u32 2147483647, %v699_v17 }
 0x155   : > { %v703_v25 = vmul.f32 %v702_v23, %v700_v21 }
 0x157   : > { %v704_v27 = vxor.u32 2147483648, %v703_v25 }
 0x159   : > { %v705_v28 = vsel %vm622_vm4, %v704_v27, %v703_v25  ;;  %vm922_vm4 = vcmp.lt.s32.totalorder %v921_v59, 2 }
 0x15a   : > { %v708_v30 = vsel %vm621_vm5, %v2522_v41, %v705_v28  ;;  %vm712_vm5 = vweird.f32 %v2522_v41 }
 0x15b   : > { %2305 = vcosq.f32 %v708_v30 }
 0x15c   : > { %2307 = vsinq.f32 %v708_v30 }
 0x15f   : > { %v2302_v19 = vpop.eup %2301 }
 0x160   : > { %v2304_v36 = vpop.eup %2303  ;;  %v616_v38 = vxor.u32 2147483648, %v2302_v19 }
 0x161   : > { %v613_v40 = vxor.u32 2147483648, %v2304_v36 }
 0x162   : > { %v617_v47 = vsel %vm615_vm6, %v616_v38, %v2304_v36  ;;  %v824_v52 = vsel %vm822_vm11, %v616_v38, %v2304_v36  ;;  %vm1157_vm6 = vcmask 1041408  }
 0x163   : > { %v614_v45 = vsel %vm612_vm7, %v2302_v19, %v613_v40  ;;  %v821_v51 = vsel %vm819_vm10, %v2302_v19, %v613_v40  ;;  %vm1144_vm7 = vcmask 80896  }
 0x164   : > { %v618_v49 = vsel %vm611_vm9, %v614_v45, %v617_v47  ;;  %v825_v56 = vsel %vm818_vm12, %v821_v51, %v824_v52 }
 0x165   : > { %v2641_v48 = vsel %vm609_vm8, nan, %v618_v49  ;;  %v826_v57 = vsel %vm609_vm8, nan, %v825_v56 }
 0x166   : > { %v982_v58 = vmul.f32 2.0, %v2641_v48 }
 0x168   : > { %v2306_v61 = vpop.eup %2305  ;;  %v988_v0 = vmul.f32 %v982_v58, %v826_v57  ;;  %v984_v4 = vmul.f32 %v982_v58, %v2641_v48 }
 0x169   : > { %v2308_v1 = vpop.eup %2307  ;;  %v719_v3 = vxor.u32 2147483648, %v2306_v61 }
 0x16a   : > { %v716_v2 = vxor.u32 2147483648, %v2308_v1  ;;  %v1038_v33 = vmul.f32 %v988_v0, %v982_v58  ;;  %v2080_v13 = vadd.f32 -1.0, %v984_v4 }
 0x16b   : > { %v720_v42 = vsel %vm718_vm14, %v719_v3, %v2308_v1  ;;  %v928_v44 = vsel %vm926_vm15, %v719_v3, %v2308_v1  ;;  %v1116_v3 = vld [vmem:[%s2878_s2] sm:$0xff] }
 0x16c   : > { %v717_v5 = vsel %vm715_vm2, %v2306_v61, %v716_v2  ;;  %v925_v6 = vsel %vm923_vm3, %v2306_v61, %v716_v2  ;;  %v1040_v20 = vsub.f32 %v1038_v33, %v826_v57  ;;  %v1034_v23 = vmul.f32 %v2080_v13, %v982_v58  ;;  %v1119_v2 = vld [vmem:[%s2878_s2 + $0x18] sm:$0xff] }
 0x16d   : > { %v721_v37 = vsel %vm714_vm13, %v717_v5, %v720_v42  ;;  %v929_v7 = vsel %vm922_vm4, %v925_v6, %v928_v44 }
 0x16e   : > { %v722_v8 = vsel %vm712_vm5, nan, %v721_v37  ;;  %v930_v9 = vsel %vm712_vm5, nan, %v929_v7  ;;  %v1086_v28 = vmul.f32 %v1040_v20, %v982_v58  ;;  %v1036_v19 = vsub.f32 %v1034_v23, %v2641_v48 }
 0x16f   : > { %v940_v10 = vcombine.low %v2641_v48, %v722_v8  ;;  %v962_v11 = vcombine.low %v826_v57, %v930_v9  ;;  %v983_v12 = vmul.f32 2.0, %v722_v8 }
 0x170   : > { %v1088_v47 = vsub.f32 %v1086_v28, %v988_v0  ;;  %v1263_v28 = vld [vmem:[%s2880_s4 + $0x10] sm:$0xff] }
 0x171   : > { %v947_v14 = vrot.slane %v940_v10, %v946_v60  ;;  %v969_v15 = vrot.slane %v962_v11, %v946_v60  ;;  %v985_v16 = vmul.f32 %v983_v12, %v722_v8  ;;  %v989_v18 = vmul.f32 %v983_v12, %v930_v9 }
 0x173   : > { %v954_v22 = vrot.slane %v947_v14, %v946_v60  ;;  %v976_v17 = vrot.slane %v969_v15, %v946_v60  ;;  %v2081_v41 = vadd.f32 -1.0, %v985_v16  ;;  %v1014_v21 = vcombine.low %v988_v0, %v989_v18  ;;  %v1118_v0 = vld [vmem:[%s2878_s2 + $0x10] sm:$0xff] }
 0x174   : > { %v1039_v24 = vmul.f32 %v989_v18, %v983_v12 }
 0x175   : > { %v955_v25 = vcombine.high %v954_v22, %v954_v22  ;;  %v977_v26 = vcombine.high %v976_v17, %v976_v17  ;;  %v992_v27 = vcombine.low %v2080_v13, %v2081_v41  ;;  %v1021_v39 = vrot.slane %v1014_v21, %v946_v60 }
 0x176   : > { %v1035_v29 = vmul.f32 %v2081_v41, %v983_v12  ;;  %v1041_v30 = vsub.f32 %v1039_v24, %v930_v9 }
 0x177   : > { %958 = vst.msk [vmem:[#allocation2 + $0x3] ss:$8 sm:$0x3] %vm2512_vm1, %v955_v25  ;;  %980 = vst.msk [vmem:[#allocation2 + $0x6] ss:$8 sm:$0x3] %vm2512_vm1, %v977_v26  ;;  %v999_v32 = vrot.slane %v992_v27, %v946_v60  ;;  %v1028_v35 = vrot.slane %v1021_v39, %v946_v60 }
 0x178   : > { %v1037_v36 = vsub.f32 %v1035_v29, %v722_v8  ;;  %v1066_v38 = vcombine.low %v1040_v20, %v1041_v30  ;;  %v1087_v31 = vmul.f32 %v1041_v30, %v983_v12  ;;  %v1261_v26 = vld [vmem:[%s2880_s4] sm:$0xff]  ;;  %v1262_v39 = vld [vmem:[%s2880_s4 + $0x8] sm:$0xff]  ;;  %v1264_v29 = vld [vmem:[%s2880_s4 + $0x18] sm:$0xff] }
 0x179   : > { %v1006_v40 = vrot.slane %v999_v32, %v946_v60  ;;  %v1029_v46 = vcombine.high %v1028_v35, %v1028_v35 }
 0x17a   : > { %v1044_v45 = vcombine.low %v1036_v19, %v1037_v36  ;;  %v1073_v49 = vrot.slane %v1066_v38, %v946_v60  ;;  %v1089_v50 = vsub.f32 %v1087_v31, %v989_v18 }
 0x17b   : > { %v1007_v51 = vcombine.high %v1006_v40, %v1006_v40  ;;  %1032 = vst.msk [vmem:[#allocation2 + $0x7] ss:$8 sm:$0x3] %vm2512_vm1, %v1029_v46 }
 0x17c   : > { %v1051_v52 = vrot.slane %v1044_v45, %v946_v60  ;;  %v1080_v53 = vrot.slane %v1073_v49, %v946_v60  ;;  %v1092_v54 = vcombine.low %v1088_v47, %v1089_v50 }
 0x17d   : > { %1010 = vst.msk [vmem:[#allocation2 + $0x4] ss:$8 sm:$0x3] %vm2512_vm1, %v1007_v51 }
 0x17e   : > { %v1058_v48 = vrot.slane %v1051_v52, %v946_v60  ;;  %v1081_v55 = vcombine.high %v1080_v53, %v1080_v53  ;;  %v1099_v56 = vrot.slane %v1092_v54, %v946_v60 }
 0x180   : > { %v1059_v58 = vcombine.high %v1058_v48, %v1058_v48  ;;  %1084 = vst.msk [vmem:[#allocation2 + $0x10] ss:$8 sm:$0x3] %vm2512_vm1, %v1081_v55  ;;  %v1106_v59 = vrot.slane %v1099_v56, %v946_v60 }
 0x182   : > { %1062 = vst.msk [vmem:[#allocation2 + $0x5] ss:$8 sm:$0x3] %vm2512_vm1, %v1059_v58  ;;  %v1107_v61 = vcombine.high %v1106_v59, %v1106_v59 }
 0x184   : > { %1110 = vst.msk [vmem:[#allocation2 + $0x11] ss:$8 sm:$0x3] %vm2512_vm1, %v1107_v61  ;;  %vm1289_vm1 = vcmask 261120  }
 0x189   : > { %v1113_v57 = vld [vmem:[#allocation2 + $0x8] sm:$0xff]  ;;  %v1112_v62 = vld [vmem:[#allocation2] sm:$0xff] }
 0x18b   : > { %v1115_v63 = vld [vmem:[#allocation2 + $0x18] sm:$0x3]  ;;  %v1114_v1 = vld [vmem:[#allocation2 + $0x10] sm:$0x3] }
 0x18c   : > { %2082 = vmatprep.subr.msk.mxu1 %vm1157_vm6, %v1115_v63 }
 0x18d   : > { %2083 = vmatpush1.msk.msra.mxu1 %vm1157_vm6, %v1114_v1 }
 0x18e   : > { %1194 = vmatprep.subr.mxu1 %v1113_v57 }
 0x18f   : > { %1195 = vmatpush1.msra.mxu1 %v1112_v62  ;;  %v2092_v62 = vld [vmem:[%s2880_s4 + $0x20] sm:$0xff] }
 0x190   : > { %2084 = vmatmul.mubr.msk.f32.vlgmr.msra.gmra.mxu1 %vm1144_vm7, %v1116_v3 }
 0x191   : > { %1234 = vmatprep.mubr.f32.mxu1 %v2366_v43 }
 0x194   : > { %2085 = vmatmul.mubr.msk.f32.gmra.mxu1 %vm1144_vm7, %v1117_v34 }
 0x195   : > { %1240 = vmatprep.mubr.f32.mxu1 %v2366_v43 }
 0x198   : > { %2086 = vmatmul.mubr.msk.f32.gmra.mxu1 %vm1144_vm7, %v1118_v0  ;;  %v2093_v0 = vld [vmem:[%s2880_s4 + $0x28] sm:$0xff] }
 0x199   : > { %1246 = vmatprep.mubr.f32.mxu1 %v2366_v43 }
 0x19c   : > { %2087 = vmatmul.mubr.msk.f32.gmra.mxu1 %vm1144_vm7, %v1119_v2  ;;  %v2094_v2 = vld [vmem:[%s2880_s4 + $0x30] sm:$0xff] }
 0x19d   : > { %1366 = vmatprep.mubr.f32.mxu1 %v2366_v43 }
 0x1ae   : > { %v1142_v6 = vpop.permute.xlu0 %1141  ;;  %v1132_v60 = vpop.permute.xlu1 %1131 }
 0x1b2   : > { %v1137_v8 = vpop.permute.xlu0 %1136  ;;  %v1127_v14 = vpop.permute.xlu1 %1126 }
 0x1b6   : > { %v1287_v38 = vpop.permute.xlu0 %1286  ;;  %v1282_v40 = vpop.permute.xlu1 %1281 }
 0x1ba   : > { %v1277_v51 = vpop.permute.xlu0 %1276  ;;  %v1272_v54 = vpop.permute.xlu1 %1271 }
 0x250   : > { %v1230_v42 = vpop.f32.mrf.mxu1 }
 0x251   : > { %v1231_v20 = vadd.f32 %v1230_v42, %v1127_v14  ;;  %v2095_v42 = vld [vmem:[%s2880_s4 + $0x38] sm:$0xff] }
 0x252   : > { %v1232_v44 = vpop.f32.mrf.mxu1 }
 0x253   : > { %v1233_v18 = vadd.f32 %v1232_v44, %v1127_v14  ;;  %v1412_v44 = vpop.permute.xlu0 %1411  ;;  %v1541_v14 = vld [vmem:[%s2882_s6 + $0x18] sm:$0xff] }
 0x254   : > { %v1236_v4 = vpop.f32.mrf.mxu1  ;;  %2209 = vmatprep.subr.mxu0 %v1541_v14 }
 0x255   : > { %v1237_v16 = vadd.f32 %v1236_v4, %v1132_v60  ;;  %2210 = vmatpush3.msra.mxu0 %v1541_v14 }
 0x256   : > { %v1238_v5 = vpop.f32.mrf.mxu1 }
 0x257   : > { %v1239_v15 = vadd.f32 %v1238_v5, %v1132_v60 }
 0x258   : > { %v1242_v37 = vpop.f32.mrf.mxu1 }
 0x259   : > { %v1243_v13 = vadd.f32 %v1242_v37, %v1137_v8 }
 0x25a   : > { %v1244_v7 = vpop.f32.mrf.mxu1 }
 0x25b   : > { %v1245_v11 = vadd.f32 %v1244_v7, %v1137_v8  ;;  %v1417_v7 = vpop.permute.xlu1 %1416 }
 0x25c   : > { %v1248_v33 = vpop.f32.mrf.mxu1 }
 0x25d   : > { %v1249_v9 = vadd.f32 %v1248_v33, %v1142_v6 }
 0x25e   : > { %v1250_v10 = vpop.f32.mrf.mxu1 }
 0x25f   : > { %v1251_v12 = vadd.f32 %v1250_v10, %v1142_v6 }
 0x261   : > { %2309 = vtanh.f32 %v1251_v12 }
 0x262   : > { %2311 = vtanh.f32 %v1249_v9 }
 0x263   : > { %2313 = vtanh.f32 %v1245_v11 }
 0x264   : > { %2315 = vtanh.f32 %v1243_v13 }
 0x265   : > { %2317 = vtanh.f32 %v1239_v15  ;;  %v1427_v15 = vpop.permute.xlu1 %1426 }
 0x266   : > { %2319 = vtanh.f32 %v1237_v16 }
 0x267   : > { %2321 = vtanh.f32 %v1233_v18 }
 0x268   : > { %2323 = vtanh.f32 %v1231_v20  ;;  %v1540_v20 = vld [vmem:[%s2882_s6 + $0x10] sm:$0xff] }
 0x269   : > { %2211 = vmatprep.subr.mxu0 %v1540_v20 }
 0x26a   : > { %2212 = vmatpush3.msra.mxu0 %v1540_v20 }
 0x26e   : > { %v2310_v22 = vpop.eup %2309 }
 0x26f   : > { %v2312_v17 = vpop.eup %2311  ;;  %1326 = vmatprep.subr.mxu1 %v2310_v22 }
 0x270   : > { %v2314_v41 = vpop.eup %2313  ;;  %1327 = vmatpush1.msra.mxu1 %v2312_v17 }
 0x271   : > { %v2316_v21 = vpop.eup %2315  ;;  %1328 = vmatprep.subr.mxu1 %v2314_v41  ;;  %v1539_v41 = vld [vmem:[%s2882_s6 + $0x8] sm:$0xff] }
 0x272   : > { %v2318_v23 = vpop.eup %2317  ;;  %1329 = vmatpush1.msra.mxu1 %v2316_v21  ;;  %2213 = vmatprep.subr.mxu0 %v1539_v41 }
 0x273   : > { %v2320_v24 = vpop.eup %2319  ;;  %1330 = vmatprep.subr.mxu1 %v2318_v23  ;;  %2214 = vmatpush3.msra.mxu0 %v1539_v41  ;;  %v1538_v23 = vld [vmem:[%s2882_s6] sm:$0xff] }
 0x274   : > { %v2322_v25 = vpop.eup %2321  ;;  %1331 = vmatpush1.msra.mxu1 %v2320_v24  ;;  %2215 = vmatprep.subr.mxu0 %v1538_v23 }
 0x275   : > { %v2324_v27 = vpop.eup %2323  ;;  %1332 = vmatprep.subr.mxu1 %v2322_v25  ;;  %2216 = vmatpush3.msra.mxu0 %v1538_v23 }
 0x276   : > { %1333 = vmatpush1.msra.mxu1 %v2324_v27 }
 0x277   : > { %2088 = vmatmul.mubr.msk.f32.vlgmr.msra.gmra.mxu1 %vm1289_vm1, %v1261_v26 }
 0x278   : > { %1372 = vmatprep.mubr.f32.mxu1 %v2366_v43 }
 0x27b   : > { %2089 = vmatmul.mubr.msk.f32.gmra.mxu1 %vm1289_vm1, %v1262_v39 }
 0x27c   : > { %1378 = vmatprep.mubr.f32.mxu1 %v2366_v43 }
 0x27f   : > { %2090 = vmatmul.mubr.msk.f32.gmra.mxu1 %vm1289_vm1, %v1263_v28 }
 0x280   : > { %1384 = vmatprep.mubr.f32.mxu1 %v2366_v43 }
 0x283   : > { %2091 = vmatmul.mubr.msk.f32.gmra.mxu1 %vm1289_vm1, %v1264_v29 }
 0x284   : > { %1505 = vmatprep.mubr.f32.mxu1 %v2366_v43 }
 0x337   : > { %v1368_v30 = vpop.f32.mrf.mxu1 }
 0x338   : > { %v1369_v56 = vadd.f32 %v1368_v30, %v1272_v54 }
 0x339   : > { %v1370_v32 = vpop.f32.mrf.mxu1 }
 0x33a   : > { %v1371_v55 = vadd.f32 %v1370_v32, %v1272_v54 }
 0x33b   : > { %v1374_v35 = vpop.f32.mrf.mxu1 }
 0x33c   : > { %v1375_v48 = vadd.f32 %v1374_v35, %v1277_v51 }
 0x33d   : > { %v1376_v19 = vpop.f32.mrf.mxu1 }
 0x33e   : > { %v1377_v53 = vadd.f32 %v1376_v19, %v1277_v51 }
 0x33f   : > { %v1380_v36 = vpop.f32.mrf.mxu1 }
 0x340   : > { %v1381_v52 = vadd.f32 %v1380_v36, %v1282_v40 }
 0x341   : > { %v1382_v31 = vpop.f32.mrf.mxu1 }
 0x342   : > { %v1383_v49 = vadd.f32 %v1382_v31, %v1282_v40 }
 0x343   : > { %v1386_v46 = vpop.f32.mrf.mxu1 }
 0x344   : > { %v1387_v47 = vadd.f32 %v1386_v46, %v1287_v38 }
 0x345   : > { %v1388_v45 = vpop.f32.mrf.mxu1 }
 0x346   : > { %v1389_v50 = vadd.f32 %v1388_v45, %v1287_v38 }
 0x348   : > { %2325 = vtanh.f32 %v1389_v50 }
 0x349   : > { %2327 = vtanh.f32 %v1387_v47 }
 0x34a   : > { %2329 = vtanh.f32 %v1383_v49 }
 0x34b   : > { %2331 = vtanh.f32 %v1381_v52 }
 0x34c   : > { %2333 = vtanh.f32 %v1377_v53 }
 0x34d   : > { %2335 = vtanh.f32 %v1375_v48 }
 0x34e   : > { %2337 = vtanh.f32 %v1371_v55 }
 0x34f   : > { %2339 = vtanh.f32 %v1369_v56 }
 0x355   : > { %v2326_v58 = vpop.eup %2325 }
 0x356   : > { %v2328_v59 = vpop.eup %2327  ;;  %1465 = vmatprep.subr.mxu1 %v2326_v58 }
 0x357   : > { %v2330_v61 = vpop.eup %2329  ;;  %1466 = vmatpush1.msra.mxu1 %v2328_v59 }
 0x358   : > { %v2332_v63 = vpop.eup %2331  ;;  %1467 = vmatprep.subr.mxu1 %v2330_v61 }
 0x359   : > { %v2334_v1 = vpop.eup %2333  ;;  %1468 = vmatpush1.msra.mxu1 %v2332_v63 }
 0x35a   : > { %v2336_v57 = vpop.eup %2335  ;;  %1469 = vmatprep.subr.mxu1 %v2334_v1 }
 0x35b   : > { %v2338_v3 = vpop.eup %2337  ;;  %1470 = vmatpush1.msra.mxu1 %v2336_v57 }
 0x35c   : > { %v2340_v34 = vpop.eup %2339  ;;  %1471 = vmatprep.subr.mxu1 %v2338_v3 }
 0x35d   : > { %1472 = vmatpush1.msra.mxu1 %v2340_v34 }
 0x35e   : > { %2100 = vmatmul.mubr.msk.f32.vlgmr.msra.gmra.mxu1 %vm1289_vm1, %v2092_v62  ;;  %2265 = vmatprep.subr.mxu1 %v1541_v14 }
 0x35f   : > { %1511 = vmatprep.mubr.f32.mxu1 %v2366_v43  ;;  %2269 = vmatpush3.msra.mxu1 %v1541_v14 }
 0x360   : > { %2266 = vmatprep.subr.mxu1 %v1540_v20 }
 0x361   : > { %2270 = vmatpush3.msra.mxu1 %v1540_v20 }
 0x362   : > { %2101 = vmatmul.mubr.msk.f32.gmra.mxu1 %vm1289_vm1, %v2093_v0  ;;  %2267 = vmatprep.subr.mxu1 %v1539_v41 }
 0x363   : > { %1517 = vmatprep.mubr.f32.mxu1 %v2366_v43  ;;  %2271 = vmatpush3.msra.mxu1 %v1539_v41 }
 0x364   : > { %2268 = vmatprep.subr.mxu1 %v1538_v23 }
 0x365   : > { %2272 = vmatpush3.msra.mxu1 %v1538_v23 }
 0x366   : > { %2102 = vmatmul.mubr.msk.f32.gmra.mxu1 %vm1289_vm1, %v2094_v2 }
 0x367   : > { %1523 = vmatprep.mubr.f32.mxu1 %v2366_v43  ;;  %v1422_v43 = vpop.permute.xlu0 %1421 }
 0x36a   : > { %2103 = vmatmul.mubr.msk.f32.gmra.mxu1 %vm1289_vm1, %v2095_v42 }
 0x41e   : > { %v1507_v4 = vpop.f32.mrf.mxu1 }
 0x41f   : > { %v1508_v5 = vadd.f32 %v1507_v4, %v1412_v44 }
 0x420   : > { %v1509_v6 = vpop.f32.mrf.mxu1 }
 0x421   : > { %2341 = vtanh.f32 %v1508_v5  ;;  %v1510_v37 = vadd.f32 %v1509_v6, %v1412_v44  ;;  %v2768_v44 = vld [vmem:[%s2883_s7] ss:$0 sm:$0xff] }
 0x422   : > { %v1513_v60 = vpop.f32.mrf.mxu1 }
 0x423   : > { %2343 = vtanh.f32 %v1510_v37  ;;  %v1514_v33 = vadd.f32 %v1513_v60, %v1417_v7 }
 0x424   : > { %v1515_v8 = vpop.f32.mrf.mxu1 }
 0x425   : > { %2345 = vtanh.f32 %v1514_v33  ;;  %v1516_v9 = vadd.f32 %v1515_v8, %v1417_v7 }
 0x426   : > { %v1519_v10 = vpop.f32.mrf.mxu1 }
 0x427   : > { %2347 = vtanh.f32 %v1516_v9  ;;  %v1520_v11 = vadd.f32 %v1519_v10, %v1422_v43 }
 0x428   : > { %v1521_v12 = vpop.f32.mrf.mxu1 }
 0x429   : > { %2349 = vtanh.f32 %v1520_v11  ;;  %v1522_v13 = vadd.f32 %v1521_v12, %v1422_v43 }
 0x42a   : > { %v1525_v16 = vpop.f32.mrf.mxu1 }
 0x42b   : > { %2351 = vtanh.f32 %v1522_v13  ;;  %v1526_v18 = vadd.f32 %v1525_v16, %v1427_v15 }
 0x42c   : > { %v1527_v22 = vpop.f32.mrf.mxu1 }
 0x42d   : > { %2353 = vtanh.f32 %v1526_v18  ;;  %v1528_v17 = vadd.f32 %v1527_v22, %v1427_v15 }
 0x42e   : > { %v2342_v21 = vpop.eup %2341 }
 0x42f   : > { %2355 = vtanh.f32 %v1528_v17  ;;  %1549 = vxpose.xlu0.b32.start [1/4] (short) %v2342_v21, 128 }
 0x430   : > { %v2344_v24 = vpop.eup %2343 }
 0x431   : > { %1581 = vxpose.xlu1.b32.start [1/4] (short) %v2344_v24, 128 }
 0x432   : > { %v2346_v25 = vpop.eup %2345 }
 0x433   : > { %1550 = vxpose.xlu0.b32.cont [2/4] (short) %v2346_v25, 128 }
 0x434   : > { %v2348_v26 = vpop.eup %2347 }
 0x435   : > { %1582 = vxpose.xlu1.b32.cont [2/4] (short) %v2348_v26, 128 }
 0x436   : > { %v2350_v27 = vpop.eup %2349 }
 0x437   : > { %1551 = vxpose.xlu0.b32.cont [3/4] (short) %v2350_v27, 128 }
 0x438   : > { %v2352_v39 = vpop.eup %2351 }
 0x439   : > { %1583 = vxpose.xlu1.b32.cont [3/4] (short) %v2352_v39, 128 }
 0x43a   : > { %v2354_v28 = vpop.eup %2353 }
 0x43b   : > { %1552 = vxpose.xlu0.b32.end [4/4] (short) %v2354_v28, 128 }
 0x43c   : > { %v2356_v29 = vpop.eup %2355 }
 0x43d   : > { %1584 = vxpose.xlu1.b32.end [4/4] (short) %v2356_v29, 128 }
 0x4ab   : > { %v1565_v30 = vpop.trf.xlu0 }
 0x4ac   : > { %2217 = vmatprep.mubr.msk.f32.mxu0 %vm1289_vm1, %v1565_v30 }
 0x4ad   : > { %v1597_v32 = vpop.trf.xlu1 }
 0x4af   : > { %v1566_v35 = vpop.trf.xlu0 }
 0x4b0   : > { %2218 = vmatmul.mubr.msk.f32.vlgmr.msra.gmra.mxu0 %vm1289_vm1, %v1566_v35 }
 0x4b1   : > { %v1598_v19 = vpop.trf.xlu1 }
 0x4b3   : > { %v1567_v36 = vpop.trf.xlu0 }
 0x4b4   : > { %2220 = vmatprep.mubr.msk.f32.mxu0 %vm1289_vm1, %v1567_v36 }
 0x4b5   : > { %v1599_v31 = vpop.trf.xlu1 }
 0x4b7   : > { %v1568_v38 = vpop.trf.xlu0 }
 0x4b8   : > { %2221 = vmatmul.mubr.msk.f32.gmra.mxu0 %vm1289_vm1, %v1568_v38 }
 0x4b9   : > { %v1600_v46 = vpop.trf.xlu1 }
 0x4bb   : > { %v1569_v40 = vpop.trf.xlu0 }
 0x4bc   : > { %2223 = vmatprep.mubr.msk.f32.mxu0 %vm1289_vm1, %v1569_v40 }
 0x4bd   : > { %v1601_v49 = vpop.trf.xlu1 }
 0x4bf   : > { %v1570_v47 = vpop.trf.xlu0 }
 0x4c0   : > { %2224 = vmatmul.mubr.msk.f32.gmra.mxu0 %vm1289_vm1, %v1570_v47 }
 0x4c1   : > { %v1602_v51 = vpop.trf.xlu1 }
 0x4c3   : > { %v1571_v45 = vpop.trf.xlu0 }
 0x4c4   : > { %2226 = vmatprep.mubr.msk.f32.mxu0 %vm1289_vm1, %v1571_v45 }
 0x4c5   : > { %v1603_v54 = vpop.trf.xlu1 }
 0x4c7   : > { %v1572_v50 = vpop.trf.xlu0 }
 0x4c8   : > { %2227 = vmatmul.mubr.msk.f32.gmra.mxu0 %vm1289_vm1, %v1572_v50 }
 0x4c9   : > { %v1604_v55 = vpop.trf.xlu1 }
 0x4cb   : > { %v1573_v52 = vpop.trf.xlu0 }
 0x4cc   : > { %2229 = vmatprep.mubr.msk.f32.mxu0 %vm1289_vm1, %v1573_v52 }
 0x4cd   : > { %v1605_v59 = vpop.trf.xlu1 }
 0x4cf   : > { %v1574_v53 = vpop.trf.xlu0 }
 0x4d0   : > { %2230 = vmatmul.mubr.msk.f32.gmra.mxu0 %vm1289_vm1, %v1574_v53 }
 0x4d1   : > { %v1606_v63 = vpop.trf.xlu1 }
 0x4d3   : > { %v1575_v48 = vpop.trf.xlu0 }
 0x4d4   : > { %2232 = vmatprep.mubr.msk.f32.mxu1 %vm1289_vm1, %v1575_v48 }
 0x4d5   : > { %v1607_v3 = vpop.trf.xlu1 }
 0x4d7   : > { %v1576_v56 = vpop.trf.xlu0 }
 0x4d8   : > { %2233 = vmatmul.mubr.msk.f32.vlgmr.msra.gmra.mxu1 %vm1289_vm1, %v1576_v56 }
 0x4d9   : > { %v1608_v62 = vpop.trf.xlu1 }
 0x4db   : > { %v1577_v58 = vpop.trf.xlu0 }
 0x4dc   : > { %2235 = vmatprep.mubr.msk.f32.mxu1 %vm1289_vm1, %v1577_v58 }
 0x4dd   : > { %v1609_v34 = vpop.trf.xlu1 }
 0x4df   : > { %v1578_v61 = vpop.trf.xlu0 }
 0x4e0   : > { %2236 = vmatmul.mubr.msk.f32.gmra.mxu1 %vm1289_vm1, %v1578_v61 }
 0x4e1   : > { %v1610_v0 = vpop.trf.xlu1 }
 0x4e3   : > { %v1579_v1 = vpop.trf.xlu0 }
 0x4e4   : > { %2238 = vmatprep.mubr.msk.f32.mxu1 %vm1289_vm1, %v1579_v1 }
 0x4e5   : > { %v1611_v2 = vpop.trf.xlu1 }
 0x4e7   : > { %v1580_v57 = vpop.trf.xlu0 }
 0x4e8   : > { %2239 = vmatmul.mubr.msk.f32.gmra.mxu1 %vm1289_vm1, %v1580_v57 }
 0x4e9   : > { %2241 = vmatprep.mubr.msk.f32.mxu1 %vm1289_vm1, %v1597_v32  ;;  %v1612_v42 = vpop.trf.xlu1 }
 0x4ec   : > { %2242 = vmatmul.mubr.msk.f32.gmra.mxu1 %vm1289_vm1, %v1598_v19 }
 0x4ed   : > { %2244 = vmatprep.mubr.msk.f32.mxu1 %vm1289_vm1, %v1599_v31 }
 0x4f0   : > { %2245 = vmatmul.mubr.msk.f32.gmra.mxu1 %vm1289_vm1, %v1600_v46 }
 0x4f1   : > { %2247 = vmatprep.mubr.msk.f32.mxu1 %vm1289_vm1, %v1601_v49 }
 0x4f4   : > { %2248 = vmatmul.mubr.msk.f32.gmra.mxu1 %vm1289_vm1, %v1602_v51 }
 0x4f5   : > { %2250 = vmatprep.mubr.msk.f32.mxu1 %vm1289_vm1, %v1603_v54 }
 0x4f8   : > { %2251 = vmatmul.mubr.msk.f32.gmra.mxu1 %vm1289_vm1, %v1604_v55 }
 0x4f9   : > { %2253 = vmatprep.mubr.msk.f32.mxu1 %vm1289_vm1, %v1605_v59 }
 0x4fc   : > { %2254 = vmatmul.mubr.msk.f32.gmra.mxu1 %vm1289_vm1, %v1606_v63 }
 0x4fd   : > { %2256 = vmatprep.mubr.msk.f32.mxu1 %vm1289_vm1, %v1607_v3 }
 0x500   : > { %2257 = vmatmul.mubr.msk.f32.gmra.mxu1 %vm1289_vm1, %v1608_v62 }
 0x501   : > { %2259 = vmatprep.mubr.msk.f32.mxu1 %vm1289_vm1, %v1609_v34 }
 0x504   : > { %2260 = vmatmul.mubr.msk.f32.gmra.mxu1 %vm1289_vm1, %v1610_v0 }
 0x505   : > { %2262 = vmatprep.mubr.msk.f32.mxu1 %vm1289_vm1, %v1611_v2 }
 0x508   : > { %2263 = vmatmul.mubr.msk.f32.gmra.mxu1 %vm1289_vm1, %v1612_v42 }
 0x570   : > { %v2219_v4 = vpop.f32.mrf.mxu0 }
 0x571   : > { %v1781_v5 = vadd.f32 %v2219_v4, %v2768_v44 }
 0x572   : > { %v1775_v6 = vpop.f32.mrf.mxu0 }
 0x573   : > { %1935 = vst.msk [vmem:[%s2775_s17 + $0x8] sm:$0xff] %vm342_vm0, %v1781_v5  ;;  %v1776_v37 = vadd.f32 %v2768_v44, %v1775_v6 }
 0x575   : > { %1934 = vst.msk [vmem:[%s2775_s17] sm:$0xff] %vm342_vm0, %v1776_v37 }
 0x578   : > { %v2222_v7 = vpop.f32.mrf.mxu0 }
 0x579   : > { %v1791_v60 = vadd.f32 %v2222_v7, %v2768_v44 }
 0x57a   : > { %v1785_v33 = vpop.f32.mrf.mxu0 }
 0x57b   : > { %1937 = vst.msk [vmem:[%s2775_s17 + $0x18] sm:$0xff] %vm342_vm0, %v1791_v60  ;;  %v1786_v8 = vadd.f32 %v2768_v44, %v1785_v33 }
 0x57d   : > { %1936 = vst.msk [vmem:[%s2775_s17 + $0x10] sm:$0xff] %vm342_vm0, %v1786_v8 }
 0x580   : > { %v2225_v9 = vpop.f32.mrf.mxu0 }
 0x581   : > { %v1801_v43 = vadd.f32 %v2225_v9, %v2768_v44 }
 0x582   : > { %v1795_v10 = vpop.f32.mrf.mxu0 }
 0x583   : > { %1939 = vst.msk [vmem:[%s2775_s17 + $0x28] sm:$0xff] %vm342_vm0, %v1801_v43  ;;  %v1796_v11 = vadd.f32 %v2768_v44, %v1795_v10 }
 0x585   : > { %1938 = vst.msk [vmem:[%s2775_s17 + $0x20] sm:$0xff] %vm342_vm0, %v1796_v11 }
 0x588   : > { %v2228_v12 = vpop.f32.mrf.mxu0 }
 0x589   : > { %v1811_v13 = vadd.f32 %v2228_v12, %v2768_v44 }
 0x58a   : > { %v1805_v14 = vpop.f32.mrf.mxu0 }
 0x58b   : > { %1941 = vst.msk [vmem:[%s2775_s17 + $0x38] sm:$0xff] %vm342_vm0, %v1811_v13  ;;  %v1806_v15 = vadd.f32 %v2768_v44, %v1805_v14 }
 0x58d   : > { %1940 = vst.msk [vmem:[%s2775_s17 + $0x30] sm:$0xff] %vm342_vm0, %v1806_v15 }
 0x590   : > { %v2231_v16 = vpop.f32.mrf.mxu0 }
 0x591   : > { %v1821_v18 = vadd.f32 %v2231_v16, %v2768_v44 }
 0x592   : > { %v1815_v20 = vpop.f32.mrf.mxu0 }
 0x593   : > { %1943 = vst.msk [vmem:[%s2775_s17 + $0x48] sm:$0xff] %vm342_vm0, %v1821_v18  ;;  %v1816_v22 = vadd.f32 %v2768_v44, %v1815_v20 }
 0x595   : > { %1942 = vst.msk [vmem:[%s2775_s17 + $0x40] sm:$0xff] %vm342_vm0, %v1816_v22 }
 0x598   : > { %v2234_v17 = vpop.f32.mrf.mxu1 }
 0x599   : > { %v1831_v41 = vadd.f32 %v2234_v17, %v2768_v44 }
 0x59a   : > { %v1825_v21 = vpop.f32.mrf.mxu1 }
 0x59b   : > { %1945 = vst.msk [vmem:[%s2775_s17 + $0x58] sm:$0xff] %vm342_vm0, %v1831_v41  ;;  %v1826_v23 = vadd.f32 %v2768_v44, %v1825_v21 }
 0x59d   : > { %1944 = vst.msk [vmem:[%s2775_s17 + $0x50] sm:$0xff] %vm342_vm0, %v1826_v23 }
 0x5a0   : > { %v2237_v24 = vpop.f32.mrf.mxu1 }
 0x5a1   : > { %v1841_v25 = vadd.f32 %v2237_v24, %v2768_v44 }
 0x5a2   : > { %v1835_v26 = vpop.f32.mrf.mxu1 }
 0x5a3   : > { %1947 = vst.msk [vmem:[%s2775_s17 + $0x68] sm:$0xff] %vm342_vm0, %v1841_v25  ;;  %v1836_v27 = vadd.f32 %v2768_v44, %v1835_v26 }
 0x5a5   : > { %1946 = vst.msk [vmem:[%s2775_s17 + $0x60] sm:$0xff] %vm342_vm0, %v1836_v27 }
 0x5a8   : > { %v2240_v39 = vpop.f32.mrf.mxu1 }
 0x5a9   : > { %v1851_v28 = vadd.f32 %v2240_v39, %v2768_v44 }
 0x5aa   : > { %v1845_v29 = vpop.f32.mrf.mxu1 }
 0x5ab   : > { %1949 = vst.msk [vmem:[%s2775_s17 + $0x78] sm:$0xff] %vm342_vm0, %v1851_v28  ;;  %v1846_v30 = vadd.f32 %v2768_v44, %v1845_v29 }
 0x5ac   : > { %v2243_v32 = vpop.f32.mrf.mxu1 }
 0x5ad   : > { %1948 = vst.msk [vmem:[%s2775_s17 + $0x70] sm:$0xff] %vm342_vm0, %v1846_v30  ;;  %v1861_v35 = vadd.f32 %v2243_v32, %v2768_v44 }
 0x5ae   : > { %v1855_v19 = vpop.f32.mrf.mxu1 }
 0x5af   : > { %1951 = vst.msk [vmem:[%s2775_s17 + $0x88] sm:$0xff] %vm342_vm0, %v1861_v35  ;;  %v1856_v36 = vadd.f32 %v2768_v44, %v1855_v19 }
 0x5b0   : > { %v2246_v38 = vpop.f32.mrf.mxu1 }
 0x5b1   : > { %1950 = vst.msk [vmem:[%s2775_s17 + $0x80] sm:$0xff] %vm342_vm0, %v1856_v36  ;;  %v1871_v31 = vadd.f32 %v2246_v38, %v2768_v44 }
 0x5b2   : > { %v1865_v40 = vpop.f32.mrf.mxu1 }
 0x5b3   : > { %1953 = vst.msk [vmem:[%s2775_s17 + $0x98] sm:$0xff] %vm342_vm0, %v1871_v31  ;;  %v1866_v46 = vadd.f32 %v2768_v44, %v1865_v40 }
 0x5b4   : > { %v2249_v47 = vpop.f32.mrf.mxu1 }
 0x5b5   : > { %1952 = vst.msk [vmem:[%s2775_s17 + $0x90] sm:$0xff] %vm342_vm0, %v1866_v46  ;;  %v1881_v45 = vadd.f32 %v2249_v47, %v2768_v44 }
 0x5b6   : > { %v1875_v49 = vpop.f32.mrf.mxu1 }
 0x5b7   : > { %1955 = vst.msk [vmem:[%s2775_s17 + $0xa8] sm:$0xff] %vm342_vm0, %v1881_v45  ;;  %v1876_v50 = vadd.f32 %v2768_v44, %v1875_v49 }
 0x5b8   : > { %v2252_v51 = vpop.f32.mrf.mxu1 }
 0x5b9   : > { %1954 = vst.msk [vmem:[%s2775_s17 + $0xa0] sm:$0xff] %vm342_vm0, %v1876_v50  ;;  %v1891_v52 = vadd.f32 %v2252_v51, %v2768_v44 }
 0x5ba   : > { %v1885_v53 = vpop.f32.mrf.mxu1 }
 0x5bb   : > { %1957 = vst.msk [vmem:[%s2775_s17 + $0xb8] sm:$0xff] %vm342_vm0, %v1891_v52  ;;  %v1886_v54 = vadd.f32 %v2768_v44, %v1885_v53 }
 0x5bc   : > { %v2255_v48 = vpop.f32.mrf.mxu1 }
 0x5bd   : > { %1956 = vst.msk [vmem:[%s2775_s17 + $0xb0] sm:$0xff] %vm342_vm0, %v1886_v54  ;;  %v1901_v55 = vadd.f32 %v2255_v48, %v2768_v44 }
 0x5be   : > { %v1895_v56 = vpop.f32.mrf.mxu1 }
 0x5bf   : > { %1959 = vst.msk [vmem:[%s2775_s17 + $0xc8] sm:$0xff] %vm342_vm0, %v1901_v55  ;;  %v1896_v58 = vadd.f32 %v2768_v44, %v1895_v56 }
 0x5c0   : > { %v2258_v59 = vpop.f32.mrf.mxu1 }
 0x5c1   : > { %1958 = vst.msk [vmem:[%s2775_s17 + $0xc0] sm:$0xff] %vm342_vm0, %v1896_v58  ;;  %v1911_v61 = vadd.f32 %v2258_v59, %v2768_v44 }
 0x5c2   : > { %v1905_v63 = vpop.f32.mrf.mxu1 }
 0x5c3   : > { %1961 = vst.msk [vmem:[%s2775_s17 + $0xd8] sm:$0xff] %vm342_vm0, %v1911_v61  ;;  %v1906_v1 = vadd.f32 %v2768_v44, %v1905_v63 }
 0x5c4   : > { %v2261_v57 = vpop.f32.mrf.mxu1 }
 0x5c5   : > { %1960 = vst.msk [vmem:[%s2775_s17 + $0xd0] sm:$0xff] %vm342_vm0, %v1906_v1  ;;  %v1921_v3 = vadd.f32 %v2261_v57, %v2768_v44 }
 0x5c6   : > { %v1915_v62 = vpop.f32.mrf.mxu1 }
 0x5c7   : > { %1963 = vst.msk [vmem:[%s2775_s17 + $0xe8] sm:$0xff] %vm342_vm0, %v1921_v3  ;;  %v1916_v34 = vadd.f32 %v2768_v44, %v1915_v62 }
 0x5c8   : > { %v2264_v0 = vpop.f32.mrf.mxu1 }
 0x5c9   : > { %1962 = vst.msk [vmem:[%s2775_s17 + $0xe0] sm:$0xff] %vm342_vm0, %v1916_v34  ;;  %v1931_v2 = vadd.f32 %v2264_v0, %v2768_v44 }
 0x5ca   : > { %v1925_v42 = vpop.f32.mrf.mxu1 }
 0x5cb   : > { %1965 = vst.msk [vmem:[%s2775_s17 + $0xf8] sm:$0xff] %vm342_vm0, %v1931_v2  ;;  %v1926_v4 = vadd.f32 %v2768_v44, %v1925_v42 }
 0x5cd   : > { %1964 = vst.msk [vmem:[%s2775_s17 + $0xf0] sm:$0xff] %vm342_vm0, %v1926_v4 }
 0x5ce PF: > { %s18_s27 = sadd.s32 1, %s2363_s27  }
 0x5cf   : > { %p15_p4 = scmp.ge.s32.totalorder %s18_s27, 6  }
 0x5d1   :  { %17 = sbr.rel (!%p15_p4) target bundleno = 1 (0x1), region = 92 }

</bundles_post_ra>
